<compile_context>
chip_gen: v5e
topology: v5e:2x2
jax: 0.10.0
libtpu: 0.0.40
codegen_flags: <defaults>
</compile_context>

<pallas_src>
import functools

import numpy as np

import jax
import jax.numpy as jnp
from jax.experimental import pallas as pl
from jax.experimental.pallas import tpu as pltpu

# torchvision vgg19().features configuration (16 convs, 5 maxpools -> 37 layers)
VGG19_CFG = [64, 64, "M", 128, 128, "M", 256, 256, 256, 256, "M",
             512, 512, 512, 512, "M", 512, 512, 512, 512, "M"]


@functools.lru_cache(maxsize=None)
def _vmem_budget():
    """Per-chip VMEM limit (~75% of capacity), clamped to [32, 96] MiB."""
    try:
        info = pltpu.get_tpu_info()
        cap = int(getattr(info, "vmem_capacity_bytes", 0))
    except Exception:
        cap = 0
    if cap <= 0:
        cap = 64 * 1024 * 1024  # conservative (v7x-sized) fallback
    return max(32 * 1024 * 1024, min(int(cap * 0.75), 96 * 1024 * 1024))


def _m_cap():
    """Cap on the flattened matmul M dimension per tile."""
    return 4096 if _vmem_budget() >= 80 * 1024 * 1024 else 2048


def _params(rank):
    return pltpu.CompilerParams(
        dimension_semantics=("parallel",) * rank,
        vmem_limit_bytes=_vmem_budget(),
    )


def _largest_divisor(n, cap):
    """Largest divisor of n that is <= cap (>=1)."""
    for d in range(min(n, max(1, cap)), 0, -1):
        if n % d == 0:
            return d
    return 1


def _pick_m_tile(total, cap):
    """Largest divisor of total that is <= cap and a multiple of 8 (or total)."""
    if total <= cap:
        return total
    for d in range(cap, 0, -1):
        if total % d == 0 and d % 8 == 0:
            return d
    return total


# ---------------------------------------------------------------------------
# Conv2d(3x3, stride=1, padding=1) + bias + ReLU (optionally also emitting the
# pre-ReLU tensor).  General path: row-tiled with a 2-row halo side input.
# ---------------------------------------------------------------------------
def _conv_kernel(x_ref, h_ref, w_ref, b_ref, *rest, emit_pre):
    # x_ref: (nb, th, wp+2, cin)   bf16  main rows of the zero-padded image
    # h_ref: (nb, 1, 2, wp+2, cin) bf16  two halo rows below this row tile
    # w_ref: (9, cin, cout)        bf16
    # b_ref: (1, cout)             f32
    # outputs (bf16): o_ref (nb, th, wp, cout) [, o_pre_ref same shape]
    # scratch: win_ref (nb, th+2, wp+2, cin) bf16
    if emit_pre:
        o_ref, o_pre_ref, win_ref = rest
    else:
        o_ref, win_ref = rest
        o_pre_ref = None

    nb, th, wpp, cin = x_ref.shape
    wp = wpp - 2
    cout = w_ref.shape[-1]
    m = nb * th * wp

    # Assemble the (th+2)-row window once in VMEM scratch (halo tiling keeps
    # the per-step footprint O(tile) instead of O(image)).
    win_ref[:, 0:th, :, :] = x_ref[...]
    win_ref[:, th:th + 2, :, :] = h_ref[:, 0]

    # 9 tap matmuls with a single f32 accumulator (MRB-friendly chain on v7x).
    acc = jnp.zeros((m, cout), jnp.float32)
    for kh in range(3):           # static unrolled tap loop -> 9 MXU matmuls
        for kw in range(3):
            xt = win_ref[:, kh:kh + th, kw:kw + wp, :].reshape(m, cin)
            acc = acc + jnp.dot(xt, w_ref[kh * 3 + kw],
                                preferred_element_type=jnp.float32)

    acc = acc + b_ref[...]
    if emit_pre:
        o_pre_ref[...] = acc.reshape(nb, th, wp, cout).astype(o_pre_ref.dtype)
    o_ref[...] = jnp.maximum(acc, 0.0).reshape(nb, th, wp, cout).astype(o_ref.dtype)


def _conv_general(x_nhwc, w9, b2, *, emit_pre):
    n, h, w, cin = x_nhwc.shape
    cout = w9.shape[-1]
    wp = ((w + 7) // 8) * 8        # sublane-aligned working width
    wr = wp + 1 - w                # right zero pad so padded width == wp + 2
    mcap = _m_cap()

    if h * wp <= 256 and n * h * wp <= 4096:
        nb, th = n, h              # fold batch into matmul M for tiny images
    else:
        nb = 1
        th = _largest_divisor(h, max(1, mcap // wp))
    grid_r = h // th
    grid_b = n // nb

    # Main rows = padded-image rows [0, h): top zero row + data rows 0..h-2.
    xm = jnp.pad(x_nhwc[:, :h - 1], ((0, 0), (1, 0), (1, wr), (0, 0)))

    # Halo rows for tile r = padded-image rows [r*th+th, r*th+th+2)
    #   slot 0 -> data row r*th+th-1 (always valid)
    #   slot 1 -> data row r*th+th, or the bottom zero-pad row for the last tile
    idx = np.arange(grid_r) * th + th
    take = np.stack([idx - 1, np.minimum(idx, h - 1)], axis=1).reshape(-1)
    valid = np.stack([idx - 1, idx], axis=1).reshape(-1) < h
    halo = jnp.take(x_nhwc, jnp.asarray(take), axis=1)            # (n, 2R, w, cin)
    halo = jnp.where(jnp.asarray(valid)[None, :, None, None], halo, 0)
    halo = jnp.pad(halo, ((0, 0), (0, 0), (1, wr), (0, 0)))
    halo = halo.reshape(n, grid_r, 2, wp + 2, cin)

    out_shapes = [jax.ShapeDtypeStruct((n, h, wp, cout), jnp.bfloat16)]
    o_spec = pl.BlockSpec((nb, th, wp, cout), lambda b, r: (b, r, 0, 0))
    out_specs = [o_spec]
    if emit_pre:
        out_shapes.append(jax.ShapeDtypeStruct((n, h, wp, cout), jnp.bfloat16))
        out_specs.append(pl.BlockSpec((nb, th, wp, cout), lambda b, r: (b, r, 0, 0)))

    res = pl.pallas_call(
        functools.partial(_conv_kernel, emit_pre=emit_pre),
        out_shape=out_shapes,
        grid_spec=pltpu.PrefetchScalarGridSpec(
            num_scalar_prefetch=0,
            grid=(grid_b, grid_r),
            in_specs=[
                pl.BlockSpec((nb, th, wp + 2, cin), lambda b, r: (b, r, 0, 0)),
                pl.BlockSpec((nb, 1, 2, wp + 2, cin), lambda b, r: (b, r, 0, 0, 0)),
                pl.BlockSpec((9, cin, cout), lambda b, r: (0, 0, 0)),
                pl.BlockSpec((1, cout), lambda b, r: (0, 0)),
            ],
            out_specs=out_specs,
            scratch_shapes=[pltpu.VMEM((nb, th + 2, wp + 2, cin), jnp.bfloat16)],
        ),
        compiler_params=_params(2),
    )(xm, halo, w9, b2)

    post = res[0]
    pre = res[1] if emit_pre else None
    if wp != w:
        post = post[:, :, :w, :]
        if pre is not None:
            pre = pre[:, :, :w, :]
    return post, pre


# Folded-tap path: one K=9*Cin contraction.  Used for layer 0 (Cin=3) and for
# tiny late-stage images (h*w <= 64), where the 9x column blowup is negligible
# and it avoids wasting MXU M / stores on W pad columns.
def _conv_cols_kernel(x_ref, w_ref, b_ref, *outs, emit_pre):
    # x_ref: (1, tm, 9*Cin) bf16; w_ref: (9*Cin, Cout) bf16; b_ref: (1, Cout) f32
    if emit_pre:
        o_ref, o_pre_ref = outs
    else:
        (o_ref,) = outs
        o_pre_ref = None
    acc = jnp.dot(x_ref[0], w_ref[...], preferred_element_type=jnp.float32)
    acc = acc + b_ref[...]
    if emit_pre:
        o_pre_ref[0] = acc.astype(o_pre_ref.dtype)
    o_ref[0] = jnp.maximum(acc, 0.0).astype(o_ref.dtype)


def _conv_columns(x_nhwc, w9, b2, *, emit_pre):
    n, h, w, cin = x_nhwc.shape
    cout = w9.shape[-1]
    xp = jnp.pad(x_nhwc, ((0, 0), (1, 1), (1, 1), (0, 0)))
    cols = jnp.concatenate(
        [xp[:, kh:kh + h, kw:kw + w, :] for kh in range(3) for kw in range(3)],
        axis=-1).reshape(n, h * w, 9 * cin)
    wcol = w9.reshape(9 * cin, cout)

    hw = h * w
    tm = _pick_m_tile(hw, _m_cap())
    grid = (n, hw // tm)

    out_shapes = [jax.ShapeDtypeStruct((n, hw, cout), jnp.bfloat16)]
    out_specs = [pl.BlockSpec((1, tm, cout), lambda b, m_: (b, m_, 0))]
    if emit_pre:
        out_shapes.append(jax.ShapeDtypeStruct((n, hw, cout), jnp.bfloat16))
        out_specs.append(pl.BlockSpec((1, tm, cout), lambda b, m_: (b, m_, 0)))

    res = pl.pallas_call(
        functools.partial(_conv_cols_kernel, emit_pre=emit_pre),
        out_shape=out_shapes,
        grid_spec=pltpu.PrefetchScalarGridSpec(
            num_scalar_prefetch=0,
            grid=grid,
            in_specs=[
                pl.BlockSpec((1, tm, 9 * cin), lambda b, m_: (b, m_, 0)),
                pl.BlockSpec((9 * cin, cout), lambda b, m_: (0, 0)),
                pl.BlockSpec((1, cout), lambda b, m_: (0, 0)),
            ],
            out_specs=out_specs,
        ),
        compiler_params=_params(2),
    )(cols, wcol, b2)

    post = res[0].reshape(n, h, w, cout)
    pre = res[1].reshape(n, h, w, cout) if emit_pre else None
    return post, pre


def conv3x3_bias_relu(x_nhwc, w9, b2, *, emit_pre):
    """Returns (relu(conv(x)+b), conv(x)+b or None), both bf16 NHWC."""
    n, h, w, cin = x_nhwc.shape
    if 9 * cin <= 128 or h * w <= 64:
        return _conv_columns(x_nhwc, w9, b2, emit_pre=emit_pre)
    return _conv_general(x_nhwc, w9, b2, emit_pre=emit_pre)


# ---------------------------------------------------------------------------
# MaxPool2d(kernel_size=2, stride=2), computed in bf16 (exact for max).
# Wrapper reshapes (N,H,W,C) -> (N,H,W/2,2C) (free, contiguous); the kernel
# pools H by pairing rows and W by splitting the lane dim.
# ---------------------------------------------------------------------------
def _maxpool_kernel(x_ref, o_ref):
    # x_ref: (1, 2*tp, wo, 2c) bf16 ; o_ref: (1, tp, wo, c) bf16
    tp, wo, c = o_ref.shape[1], o_ref.shape[2], o_ref.shape[3]
    x = x_ref[0]                                # bf16 throughout (max is exact)
    x = x.reshape(tp, 2, wo, 2 * c)             # pair up H rows
    xh = jnp.maximum(x[:, 0], x[:, 1])          # (tp, wo, 2c)
    o_ref[0] = jnp.maximum(xh[:, :, :c], xh[:, :, c:])


def maxpool2x2(x_nhwc):
    n, h, w, c = x_nhwc.shape
    assert h % 2 == 0 and w % 2 == 0
    ho, wo = h // 2, w // 2
    xr = x_nhwc.reshape(n, h, wo, 2 * c)        # free reshape (W,C contiguous)
    tp = _largest_divisor(ho, 64)
    grid = (n, ho // tp)
    return pl.pallas_call(
        _maxpool_kernel,
        out_shape=jax.ShapeDtypeStruct((n, ho, wo, c), jnp.bfloat16),
        grid_spec=pltpu.PrefetchScalarGridSpec(
            num_scalar_prefetch=0,
            grid=grid,
            in_specs=[pl.BlockSpec((1, 2 * tp, wo, 2 * c), lambda b, r: (b, r, 0, 0))],
            out_specs=pl.BlockSpec((1, tp, wo, c), lambda b, r: (b, r, 0, 0)),
        ),
        compiler_params=_params(2),
    )(xr)


# ---------------------------------------------------------------------------
# VGGFeatures equivalent
# ---------------------------------------------------------------------------
def _to_nchw_f32(x_nhwc):
    return jnp.transpose(x_nhwc, (0, 3, 1, 2)).astype(jnp.float32)


class VGGFeaturesPallas:
    """Runs the full VGG19 feature stack and collects the target layers.

    Weights are synthetic and deterministic (He-normal from PRNGKey).
    # TODO(synk): torchvision pretrained vgg19 weights are not loaded here.
    """

    def __init__(self, content_layers, style_layers, key):
        self.content_layers = content_layers
        self.style_layers = style_layers
        self.target_layers = {**content_layers, **style_layers}

        self.layers = []     # mirrors torchvision vgg19().features indexing
        self.raw_conv = {}   # layer index -> (f32 OIHW weight, f32 bias)
        in_ch = 3
        for v in VGG19_CFG:
            if v == "M":
                self.layers.append(("maxpool", None))
            else:
                key, wk, bk = jax.random.split(key, 3)
                fan_in = in_ch * 9
                wstd = (2.0 / fan_in) ** 0.5
                wgt = wstd * jax.random.normal(wk, (v, in_ch, 3, 3), jnp.float32)
                bias = 0.01 * jax.random.normal(bk, (v,), jnp.float32)
                idx = len(self.layers)
                self.raw_conv[idx] = (wgt, bias)
                w9 = jnp.transpose(wgt, (2, 3, 1, 0)).reshape(9, in_ch, v)
                self.layers.append(("conv", (w9.astype(jnp.bfloat16),
                                             bias.reshape(1, v).astype(jnp.float32))))
                self.layers.append(("relu", None))  # placeholder (fused into conv)
                in_ch = v
        assert len(self.layers) == 37

    def __call__(self, x_nchw):
        # NCHW f32 -> NHWC bf16 (activations stay bf16 between layers)
        x = jnp.transpose(x_nchw.astype(jnp.float32), (0, 2, 3, 1)).astype(jnp.bfloat16)
        feats = {}
        i = 0
        while i < len(self.layers):
            kind, p = self.layers[i]
            if kind == "conv":
                assert self.layers[i + 1][0] == "relu"
                w9, b2 = p
                relu_idx = i + 1
                emit_pre = i in self.target_layers
                post, pre = conv3x3_bias_relu(x, w9, b2, emit_pre=emit_pre)
                if emit_pre:                                # pre-ReLU conv feature
                    feats[self.target_layers[i]] = _to_nchw_f32(pre)
                if relu_idx in self.target_layers:          # post-ReLU feature
                    feats[self.target_layers[relu_idx]] = _to_nchw_f32(post)
                x = post
                i += 2
            else:  # maxpool
                x = maxpool2x2(x)
                if i in self.target_layers:
                    feats[self.target_layers[i]] = _to_nchw_f32(x)
                i += 1
        return feats


# ---------------------------------------------------------------------------
# bf16-matched XLA reference (same numerics pipeline) for end-to-end checking.
# ---------------------------------------------------------------------------
def _xla_reference(model, x_nchw):
    x = jnp.transpose(x_nchw.astype(jnp.float32), (0, 2, 3, 1)).astype(jnp.bfloat16)
    feats = {}
    i = 0
    while i < len(model.layers):
        kind, _ = model.layers[i]
        if kind == "conv":
            wgt, bias = model.raw_conv[i]
            y = jax.lax.conv_general_dilated(
                x, wgt.astype(jnp.bfloat16), (1, 1), "SAME",
                dimension_numbers=("NHWC", "OIHW", "NHWC"),
                preferred_element_type=jnp.float32) + bias.reshape(1, 1, 1, -1)
            if i in model.target_layers:
                feats[model.target_layers[i]] = _to_nchw_f32(y.astype(jnp.bfloat16))
            x = jnp.maximum(y, 0.0).astype(jnp.bfloat16)
            if i + 1 in model.target_layers:
                feats[model.target_layers[i + 1]] = _to_nchw_f32(x)
            i += 2
        else:
            n_, h_, w_, c_ = x.shape
            x = jnp.max(x.reshape(n_, h_ // 2, 2, w_ // 2, 2, c_), axis=(2, 4))
            if i in model.target_layers:
                feats[model.target_layers[i]] = _to_nchw_f32(x)
            i += 1
    return feats


def _rel_err(a, b):
    a = a.astype(jnp.float32)
    b = b.astype(jnp.float32)
    return float(jnp.linalg.norm(a - b) / (jnp.linalg.norm(b) + 1e-6))


if __name__ == "__main__":
    key = jax.random.PRNGKey(0)
    key, xk, pk, uk1, uk2, uk3, uk4 = jax.random.split(key, 7)

    # Small NCHW input consistent with VGG (3 input channels).
    x = jax.random.normal(xk, (2, 3, 32, 32), jnp.float32)

    content_layers = {21: "conv4_2"}
    style_layers = {0: "conv1_1", 5: "conv2_1", 10: "conv3_1",
                    19: "conv4_1", 28: "conv5_1"}

    model = VGGFeaturesPallas(content_layers, style_layers, pk)
    feats = jax.block_until_ready(model(x))

    expected_shapes = {
        "conv1_1": (2, 64, 32, 32),
        "conv2_1": (2, 128, 16, 16),
        "conv3_1": (2, 256, 8, 8),
        "conv4_1": (2, 512, 4, 4),
        "conv4_2": (2, 512, 4, 4),
        "conv5_1": (2, 512, 2, 2),
    }
    for name, shp in expected_shapes.items():
        assert feats[name].shape == shp, (name, feats[name].shape, shp)
        assert bool(jnp.all(jnp.isfinite(feats[name]))), name

    # (1) General halo-tiled conv kernel (multiple row tiles, dual output) vs
    #     XLA conv on the same bf16 operands with f32 accumulation.
    xt = jax.random.normal(uk1, (1, 128, 64, 64), jnp.float32)
    wt = 0.1 * jax.random.normal(uk2, (64, 64, 3, 3), jnp.float32)
    bt = 0.01 * jax.random.normal(uk3, (64,), jnp.float32)
    w9t = jnp.transpose(wt, (2, 3, 1, 0)).reshape(9, 64, 64).astype(jnp.bfloat16)
    post_t, pre_t = conv3x3_bias_relu(
        xt.astype(jnp.bfloat16), w9t,
        bt.reshape(1, -1).astype(jnp.float32), emit_pre=True)
    ref_pre = jax.lax.conv_general_dilated(
        xt.astype(jnp.bfloat16), wt.astype(jnp.bfloat16), (1, 1), "SAME",
        dimension_numbers=("NHWC", "OIHW", "NHWC"),
        preferred_element_type=jnp.float32) + bt.reshape(1, 1, 1, -1)
    ref_post = jnp.maximum(ref_pre, 0.0)
    assert jnp.allclose(pre_t.astype(jnp.float32), ref_pre, atol=3e-2, rtol=3e-2)
    assert jnp.allclose(post_t.astype(jnp.float32), ref_post, atol=3e-2, rtol=3e-2)

    # (2) MaxPool kernel vs reference 2x2/2 window max (exact in bf16).
    yt = jax.random.normal(uk4, (2, 8, 8, 64), jnp.float32).astype(jnp.bfloat16)
    mp = maxpool2x2(yt)
    ref_mp = jnp.max(yt.reshape(2, 4, 2, 4, 2, 64), axis=(2, 4))
    assert jnp.allclose(mp.astype(jnp.float32), ref_mp.astype(jnp.float32))

    # (3) End-to-end: every extracted feature vs a bf16-matched XLA reference
    #     of the full stack (checks the conv routing, halo, dual outputs and
    #     pooling through all 37 layers).
    ref_feats = _xla_reference(model, x)
    for name in expected_shapes:
        assert _rel_err(feats[name], ref_feats[name]) < 2e-2, name

    print("KERNEL_OK")
</pallas_src>

<mosaic_0001>
module attributes {stable_mosaic.version = 11 : i64} {
  func.func @_conv_cols_kernel(%arg0: i32, %arg1: i32, %arg2: memref<1x1024x27xbf16, #tpu.memory_space<vmem>>, %arg3: memref<27x64xbf16, #tpu.memory_space<vmem>>, %arg4: memref<1x64xf32, #tpu.memory_space<vmem>>, %arg5: memref<1x1024x64xbf16, #tpu.memory_space<vmem>>, %arg6: memref<1x1024x64xbf16, #tpu.memory_space<vmem>>) attributes {dimension_semantics = [#tpu.dimension_semantics<parallel>, #tpu.dimension_semantics<parallel>], iteration_bounds = array<i64: 2, 1>, scalar_prefetch = 0 : i64, scratch_operands = 0 : i64, tpu.core_type = #tpu.core_type<tc>, window_params = [{transform_indices = @transform_0, window_bounds = array<i64: 1, 1024, 27>}, {pipeline_mode = #tpu.pipeline_mode<synchronous>, transform_indices = @transform_1, window_bounds = array<i64: 27, 64>}, {pipeline_mode = #tpu.pipeline_mode<synchronous>, transform_indices = @transform_2, window_bounds = array<i64: 1, 64>}, {transform_indices = @transform_3, window_bounds = array<i64: 1, 1024, 64>}, {transform_indices = @transform_4, window_bounds = array<i64: 1, 1024, 64>}]} {
    %c0 = arith.constant 0 : index
    %c0_0 = arith.constant 0 : index
    %c0_1 = arith.constant 0 : index
    %0 = vector.load %arg2[%c0, %c0_0, %c0_1] : memref<1x1024x27xbf16, #tpu.memory_space<vmem>>, vector<1x1024x27xbf16>
    %1 = vector.shape_cast %0 : vector<1x1024x27xbf16> to vector<1024x27xbf16>
    %c0_2 = arith.constant 0 : index
    %c0_3 = arith.constant 0 : index
    %2 = vector.load %arg3[%c0_2, %c0_3] : memref<27x64xbf16, #tpu.memory_space<vmem>>, vector<27x64xbf16>
    %cst = arith.constant dense<0.000000e+00> : vector<1024x64xf32>
    %3 = tpu.matmul %1, %2, %cst {dimension_numbers = #tpu.dot_dimension_numbers<[1], [0], [0], [1], [0, 0, 1, 1], [], []>} : vector<1024x27xbf16>, vector<27x64xbf16>, vector<1024x64xf32> -> vector<1024x64xf32>
    %c0_4 = arith.constant 0 : index
    %c0_5 = arith.constant 0 : index
    %4 = vector.load %arg4[%c0_4, %c0_5] : memref<1x64xf32, #tpu.memory_space<vmem>>, vector<1x64xf32>
    %5 = vector.broadcast %4 : vector<1x64xf32> to vector<1024x64xf32>
    %6 = arith.addf %3, %5 : vector<1024x64xf32>
    %7 = arith.truncf %6 : vector<1024x64xf32> to vector<1024x64xbf16>
    %c0_6 = arith.constant 0 : index
    %c0_7 = arith.constant 0 : index
    %c0_8 = arith.constant 0 : index
    %8 = vector.load %arg6[%c0_6, %c0_7, %c0_8] : memref<1x1024x64xbf16, #tpu.memory_space<vmem>>, vector<1x1024x64xbf16>
    %9 = vector.shape_cast %8 : vector<1x1024x64xbf16> to vector<1024x64xbf16>
    %10 = vector.shape_cast %7 : vector<1024x64xbf16> to vector<1x1024x64xbf16>
    tpu.vector_store %arg6[%c0_6, %c0_7, %c0_8], %10 {strides = array<i32>} : memref<1x1024x64xbf16, #tpu.memory_space<vmem>>, vector<1x1024x64xbf16>,
    %cst_9 = arith.constant 0.000000e+00 : f32
    %11 = vector.broadcast %cst_9 : f32 to vector<1024x64xf32>
    %12 = arith.maximumf %6, %11 : vector<1024x64xf32>
    %13 = arith.truncf %12 : vector<1024x64xf32> to vector<1024x64xbf16>
    %c0_10 = arith.constant 0 : index
    %c0_11 = arith.constant 0 : index
    %c0_12 = arith.constant 0 : index
    %14 = vector.load %arg5[%c0_10, %c0_11, %c0_12] : memref<1x1024x64xbf16, #tpu.memory_space<vmem>>, vector<1x1024x64xbf16>
    %15 = vector.shape_cast %14 : vector<1x1024x64xbf16> to vector<1024x64xbf16>
    %16 = vector.shape_cast %13 : vector<1024x64xbf16> to vector<1x1024x64xbf16>
    tpu.vector_store %arg5[%c0_10, %c0_11, %c0_12], %16 {strides = array<i32>} : memref<1x1024x64xbf16, #tpu.memory_space<vmem>>, vector<1x1024x64xbf16>,
    return
  }
  func.func @transform_0(%arg0: i32, %arg1: i32) -> (i32, i32, i32) {
    %c0_i32 = arith.constant 0 : i32
    %c0_i32_0 = arith.constant 0 : i32
    return %arg0, %arg1, %c0_i32 : i32, i32, i32
  }
  func.func @transform_1(%arg0: i32, %arg1: i32) -> (i32, i32) {
    %c0_i32 = arith.constant 0 : i32
    %c0_i32_0 = arith.constant 0 : i32
    %c0_i32_1 = arith.constant 0 : i32
    return %c0_i32, %c0_i32_0 : i32, i32
  }
  func.func @transform_2(%arg0: i32, %arg1: i32) -> (i32, i32) {
    %c0_i32 = arith.constant 0 : i32
    %c0_i32_0 = arith.constant 0 : i32
    %c0_i32_1 = arith.constant 0 : i32
    return %c0_i32, %c0_i32_0 : i32, i32
  }
  func.func @transform_3(%arg0: i32, %arg1: i32) -> (i32, i32, i32) {
    %c0_i32 = arith.constant 0 : i32
    %c0_i32_0 = arith.constant 0 : i32
    return %arg0, %arg1, %c0_i32 : i32, i32, i32
  }
  func.func @transform_4(%arg0: i32, %arg1: i32) -> (i32, i32, i32) {
    %c0_i32 = arith.constant 0 : i32
    %c0_i32_0 = arith.constant 0 : i32
    return %arg0, %arg1, %c0_i32 : i32, i32, i32
  }
}

</mosaic_0001>

<bundles_post_ra>
// kernel: tpu_custom_call.1
= control target key start
LH: loop header
LB: loop body
LE: loop exit
PB: predicated region body
PF: predicated region fallthrough
CT: control target
= control target key end

     0   :  { %s2529_s15 = smov 0   ;;  %s2531_s16 = smov 0   ;;  %s3363_s0 = inlined_call_operand.vmem [shape: bf16[2,1024,27], index: 0, kind: input, shape index: {}]   ;;  %s3364_s1 = inlined_call_operand.vmem [shape: bf16[27,64], index: 1, kind: input, shape index: {}]   ;;  %s3365_s2 = inlined_call_operand.vmem [shape: f32[1,64], index: 2, kind: input, shape index: {}]   ;;  %s3366_s3 = inlined_call_operand.vmem [shape: bf16[2,1024,64], index: 3, kind: output, shape index: {0}]   ;;  %s3367_s4 = inlined_call_operand.vmem [shape: bf16[2,1024,64], index: 4, kind: output, shape index: {1}]  }
   0x1   :  { %s2533_s17 = smov 0  }
   0x2 LB: > { %s27_s18 = sadd.s32 1, %s2497_s16  ;;  %p2040_p0 = scmp.ge.s32.totalorder %s2501_s17, 1  ;;  %s2501_s17 = sphi %s2533_s17, %s15_s17   ;;  %s2497_s16 = sphi %s2531_s16, %s3369_s16   ;;  %s2493_s15 = sphi %s2529_s15, %s3368_s15  }
   0x3   : > { %p29_p1 = scmp.ge.s32.totalorder %s27_s18, 2  ;;  %p188_p2 = scmp.lt.s32.totalorder %s2501_s17, 3 }
   0x5   : > { %s3371_s18 = smov (%p29_p1, %s27_s18), 0  ;;  %p189_p3 = pnand %p2040_p0, %p188_p2 }
   0x6   : > { %p232_p4 = scmp.lt.s32.totalorder (!%p189_p3), %s2493_s15, 1 }
   0x7   : > { %192 = sbr.rel (%p189_p3) target bundleno = 414 (0x19e), region = 32 }
   0xc   : > { %v2309_v0 = vld [vmem:[%s3364_s1 + $0x8] sm:$0xf]  ;;  %v2445_v1 = vld [vmem:[%s3364_s1 + $0x8] sm:$0x30]  ;;  %vm922_vm0 = vcmask 1044480   ;;  %vm923_vm1 = vcmask 1045504  }
   0xd   : > { %v2310_v2 = vor.u32 %v2445_v1, %v2309_v0  ;;  %v2503_v3 = vmov 65535   ;;  %s3373_s15 = smov (!%p232_p4, %s2493_s15), 1  ;;  %v2444_v7 = vld [vmem:[%s3364_s1] sm:$0xff]  ;;  %vm729_vm2 = vcmask 220160   ;;  %vm1386_vm3 = vcmask 519168  }
   0xe   : > { %v924_v4 = vsel %vm922_vm0, 4294967295, %v2503_v3  ;;  %s2553_s23 = sshll.u32 %s3373_s15, 9  ;;  %v2631_v40 = vld [vmem:[%s3365_s2] ss:$0 sm:$0xff] }
   0xf   : > { %v925_v5 = vsel %vm923_vm1, %v924_v4, 0  ;;  %s2562_s28 = scalar_lea.vmem %s3363_s0, %s2553_s23  ;;  %s2643_s7 = scalar_lea.vmem %s3367_s4, %s2553_s23 }
  0x10   : > { %v927_v6 = vand.u32 %v2310_v2, %v925_v5  ;;  %v2380_v8 = vld [vmem:[%s2562_s28] sm:$0xff]  ;;  %v2381_v12 = vld [vmem:[%s2562_s28 + $0x8] sm:$0xff]  ;;  %v2382_v16 = vld [vmem:[%s2562_s28 + $0x10] sm:$0xff]  ;;  %s2651_s10 = scalar_lea.vmem %s3366_s3, %s2553_s23 }
  0x11   : > { %v2396_v9 = vld [vmem:[%s2562_s28 + $0x80] sm:$0xff]  ;;  %v2397_v13 = vld [vmem:[%s2562_s28 + $0x88] sm:$0xff]  ;;  %v2398_v17 = vld [vmem:[%s2562_s28 + $0x90] sm:$0xff] }
  0x12   : > { %935 = vmatpush.bf16.msra.mxu0 %v927_v6  ;;  %2446 = vmatpush.bf16.msra.mxu1 %v927_v6  ;;  %v2412_v10 = vld [vmem:[%s2562_s28 + $0x100] sm:$0xff]  ;;  %v2413_v14 = vld [vmem:[%s2562_s28 + $0x108] sm:$0xff]  ;;  %v2414_v18 = vld [vmem:[%s2562_s28 + $0x110] sm:$0xff] }
  0x13   : > { %2447 = vmatpush.bf16.msra.mxu2 %v927_v6  ;;  %2448 = vmatpush.bf16.msra.mxu3 %v927_v6  ;;  %v2428_v11 = vld [vmem:[%s2562_s28 + $0x180] sm:$0xff]  ;;  %v2429_v15 = vld [vmem:[%s2562_s28 + $0x188] sm:$0xff]  ;;  %v2430_v19 = vld [vmem:[%s2562_s28 + $0x190] sm:$0xff] }
  0x14   : > { %v2383_v20 = vld [vmem:[%s2562_s28 + $0x18] sm:$0xff]  ;;  %v2384_v24 = vld [vmem:[%s2562_s28 + $0x20] sm:$0xff]  ;;  %v2385_v28 = vld [vmem:[%s2562_s28 + $0x28] sm:$0xff] }
  0x15   : > { %v2399_v21 = vld [vmem:[%s2562_s28 + $0x98] sm:$0xff]  ;;  %v2400_v25 = vld [vmem:[%s2562_s28 + $0xa0] sm:$0xff]  ;;  %v2401_v29 = vld [vmem:[%s2562_s28 + $0xa8] sm:$0xff] }
  0x16   : > { %936 = vmatpush.bf16.msra.mxu0 %v2444_v7  ;;  %2449 = vmatpush.bf16.msra.mxu1 %v2444_v7  ;;  %v2415_v22 = vld [vmem:[%s2562_s28 + $0x118] sm:$0xff]  ;;  %v2416_v26 = vld [vmem:[%s2562_s28 + $0x120] sm:$0xff]  ;;  %v2417_v30 = vld [vmem:[%s2562_s28 + $0x128] sm:$0xff] }
  0x17   : > { %2450 = vmatpush.bf16.msra.mxu2 %v2444_v7  ;;  %2451 = vmatpush.bf16.msra.mxu3 %v2444_v7  ;;  %v2431_v23 = vld [vmem:[%s2562_s28 + $0x198] sm:$0xff]  ;;  %v2432_v27 = vld [vmem:[%s2562_s28 + $0x1a0] sm:$0xff]  ;;  %v2433_v31 = vld [vmem:[%s2562_s28 + $0x1a8] sm:$0xff] }
  0x18   : > { %v2386_v32 = vld [vmem:[%s2562_s28 + $0x30] sm:$0xff]  ;;  %v2387_v36 = vld [vmem:[%s2562_s28 + $0x38] sm:$0xff]  ;;  %v2388_v41 = vld [vmem:[%s2562_s28 + $0x40] sm:$0xff] }
  0x19   : > { %2311 = vmatmul.msk.bf16.vlgmr.msra.gmra.mxu0 %vm729_vm2, %v2380_v8  ;;  %2327 = vmatmul.msk.bf16.vlgmr.msra.gmra.mxu1 %vm729_vm2, %v2396_v9  ;;  %v2402_v33 = vld [vmem:[%s2562_s28 + $0xb0] sm:$0xff]  ;;  %v2403_v37 = vld [vmem:[%s2562_s28 + $0xb8] sm:$0xff]  ;;  %v2404_v42 = vld [vmem:[%s2562_s28 + $0xc0] sm:$0xff] }
  0x1a   : > { %2343 = vmatmul.msk.bf16.vlgmr.msra.gmra.mxu2 %vm729_vm2, %v2412_v10  ;;  %2359 = vmatmul.msk.bf16.vlgmr.msra.gmra.mxu3 %vm729_vm2, %v2428_v11  ;;  %v2418_v34 = vld [vmem:[%s2562_s28 + $0x130] sm:$0xff]  ;;  %v2419_v38 = vld [vmem:[%s2562_s28 + $0x138] sm:$0xff]  ;;  %v2420_v45 = vld [vmem:[%s2562_s28 + $0x140] sm:$0xff] }
  0x1b   : > { %v2434_v35 = vld [vmem:[%s2562_s28 + $0x1b0] sm:$0xff]  ;;  %v2435_v39 = vld [vmem:[%s2562_s28 + $0x1b8] sm:$0xff]  ;;  %v2436_v46 = vld [vmem:[%s2562_s28 + $0x1c0] sm:$0xff] }
  0x29   : > { %2312 = vmatmul.msk.bf16.gmra.mxu0 %vm729_vm2, %v2381_v12  ;;  %2328 = vmatmul.msk.bf16.gmra.mxu1 %vm729_vm2, %v2397_v13  ;;  %v2389_v13 = vld [vmem:[%s2562_s28 + $0x48] sm:$0xff] }
  0x2a   : > { %2344 = vmatmul.msk.bf16.gmra.mxu2 %vm729_vm2, %v2413_v14  ;;  %2360 = vmatmul.msk.bf16.gmra.mxu3 %vm729_vm2, %v2429_v15  ;;  %v2405_v14 = vld [vmem:[%s2562_s28 + $0xc8] sm:$0xff] }
  0x39   : > { %2313 = vmatmul.msk.bf16.gmra.mxu0 %vm729_vm2, %v2382_v16  ;;  %2329 = vmatmul.msk.bf16.gmra.mxu1 %vm729_vm2, %v2398_v17 }
  0x3a   : > { %2345 = vmatmul.msk.bf16.gmra.mxu2 %vm729_vm2, %v2414_v18  ;;  %2361 = vmatmul.msk.bf16.gmra.mxu3 %vm729_vm2, %v2430_v19  ;;  %v2421_v19 = vld [vmem:[%s2562_s28 + $0x148] sm:$0xff] }
  0x49   : > { %2314 = vmatmul.msk.bf16.gmra.mxu0 %vm729_vm2, %v2383_v20  ;;  %2330 = vmatmul.msk.bf16.gmra.mxu1 %vm729_vm2, %v2399_v21  ;;  %v2437_v20 = vld [vmem:[%s2562_s28 + $0x1c8] sm:$0xff] }
  0x4a   : > { %2346 = vmatmul.msk.bf16.gmra.mxu2 %vm729_vm2, %v2415_v22  ;;  %2362 = vmatmul.msk.bf16.gmra.mxu3 %vm729_vm2, %v2431_v23 }
  0x59   : > { %2315 = vmatmul.msk.bf16.gmra.mxu0 %vm729_vm2, %v2384_v24  ;;  %2331 = vmatmul.msk.bf16.gmra.mxu1 %vm729_vm2, %v2400_v25 }
  0x5a   : > { %2347 = vmatmul.msk.bf16.gmra.mxu2 %vm729_vm2, %v2416_v26  ;;  %2363 = vmatmul.msk.bf16.gmra.mxu3 %vm729_vm2, %v2432_v27 }
  0x69   : > { %2316 = vmatmul.msk.bf16.gmra.mxu0 %vm729_vm2, %v2385_v28  ;;  %2332 = vmatmul.msk.bf16.gmra.mxu1 %vm729_vm2, %v2401_v29 }
  0x6a   : > { %2348 = vmatmul.msk.bf16.gmra.mxu2 %vm729_vm2, %v2417_v30  ;;  %2364 = vmatmul.msk.bf16.gmra.mxu3 %vm729_vm2, %v2433_v31 }
  0x79   : > { %2317 = vmatmul.msk.bf16.gmra.mxu0 %vm729_vm2, %v2386_v32  ;;  %2333 = vmatmul.msk.bf16.gmra.mxu1 %vm729_vm2, %v2402_v33 }
  0x7a   : > { %2349 = vmatmul.msk.bf16.gmra.mxu2 %vm729_vm2, %v2418_v34  ;;  %2365 = vmatmul.msk.bf16.gmra.mxu3 %vm729_vm2, %v2434_v35 }
  0x89   : > { %2318 = vmatmul.msk.bf16.gmra.mxu0 %vm729_vm2, %v2387_v36  ;;  %2334 = vmatmul.msk.bf16.gmra.mxu1 %vm729_vm2, %v2403_v37 }
  0x8a   : > { %2350 = vmatmul.msk.bf16.gmra.mxu2 %vm729_vm2, %v2419_v38  ;;  %2366 = vmatmul.msk.bf16.gmra.mxu3 %vm729_vm2, %v2435_v39 }
  0x96   : > { %v938_v43 = vpop.f32.mrf.mxu0  ;;  %v1018_v44 = vpop.f32.mrf.mxu1 }
  0x97   : > { %v939_v47 = vadd.f32 %v2631_v40, %v938_v43  ;;  %v1019_v48 = vadd.f32 %v2631_v40, %v1018_v44 }
  0x99   : > { %v1258_v49 = vpack.c.bf16 %v939_v47, %v939_v47  ;;  %v1515_v50 = vmax.f32 %v939_v47, 0.0  ;;  %v1290_v51 = vpack.c.bf16 %v1019_v48, %v1019_v48  ;;  %v1547_v52 = vmax.f32 %v1019_v48, 0.0  ;;  %2319 = vmatmul.msk.bf16.gmra.mxu0 %vm729_vm2, %v2388_v41  ;;  %2335 = vmatmul.msk.bf16.gmra.mxu1 %vm729_vm2, %v2404_v42 }
  0x9a   : > { %2351 = vmatmul.msk.bf16.gmra.mxu2 %vm729_vm2, %v2420_v45  ;;  %2367 = vmatmul.msk.bf16.gmra.mxu3 %vm729_vm2, %v2436_v46 }
  0x9b   : > { %1387 = vst.msk [vmem:[%s2643_s7] sm:$0xf] %vm1386_vm3, %v1258_v49  ;;  %v1643_v53 = vpack.c.bf16 %v1515_v50, %v1515_v50  ;;  %v1675_v54 = vpack.c.bf16 %v1547_v52, %v1547_v52 }
  0x9c   : > { %1419 = vst.msk [vmem:[%s2643_s7 + $0x80] sm:$0xf] %vm1386_vm3, %v1290_v51 }
  0x9d   : > { %1771 = vst.msk [vmem:[%s2651_s10] sm:$0xf] %vm1386_vm3, %v1643_v53  ;;  %v1098_v55 = vpop.f32.mrf.mxu2  ;;  %v1178_v56 = vpop.f32.mrf.mxu3 }
  0x9e   : > { %1803 = vst.msk [vmem:[%s2651_s10 + $0x80] sm:$0xf] %vm1386_vm3, %v1675_v54  ;;  %v1099_v57 = vadd.f32 %v2631_v40, %v1098_v55  ;;  %v1179_v58 = vadd.f32 %v2631_v40, %v1178_v56  ;;  %v940_v59 = vpop.f32.mrf.mxu0  ;;  %v1020_v60 = vpop.f32.mrf.mxu1 }
  0x9f   : > { %v941_v61 = vadd.f32 %v2631_v40, %v940_v59  ;;  %v1021_v62 = vadd.f32 %v2631_v40, %v1020_v60  ;;  %v2406_v59 = vld [vmem:[%s2562_s28 + $0xd0] sm:$0xff] }
  0xa0   : > { %v1322_v63 = vpack.c.bf16 %v1099_v57, %v1099_v57  ;;  %v1579_v0 = vmax.f32 %v1099_v57, 0.0  ;;  %v1354_v1 = vpack.c.bf16 %v1179_v58, %v1179_v58  ;;  %v1611_v2 = vmax.f32 %v1179_v58, 0.0  ;;  %v2390_v58 = vld [vmem:[%s2562_s28 + $0x50] sm:$0xff] }
  0xa1   : > { %v1516_v3 = vmax.f32 %v941_v61, 0.0  ;;  %v1548_v4 = vmax.f32 %v1021_v62, 0.0  ;;  %v1259_v7 = vpack.c.bf16 %v941_v61, %v941_v61  ;;  %v1291_v9 = vpack.c.bf16 %v1021_v62, %v1021_v62 }
  0xa2   : > { %1451 = vst.msk [vmem:[%s2643_s7 + $0x100] sm:$0xf] %vm1386_vm3, %v1322_v63  ;;  %v1707_v5 = vpack.c.bf16 %v1579_v0, %v1579_v0  ;;  %v1739_v6 = vpack.c.bf16 %v1611_v2, %v1611_v2  ;;  %v2422_v0 = vld [vmem:[%s2562_s28 + $0x150] sm:$0xff] }
  0xa3   : > { %1483 = vst.msk [vmem:[%s2643_s7 + $0x180] sm:$0xf] %vm1386_vm3, %v1354_v1  ;;  %v1644_v8 = vpack.c.bf16 %v1516_v3, %v1516_v3  ;;  %v1676_v10 = vpack.c.bf16 %v1548_v4, %v1548_v4  ;;  %v2438_v1 = vld [vmem:[%s2562_s28 + $0x1d0] sm:$0xff] }
  0xa4   : > { %1835 = vst.msk [vmem:[%s2651_s10 + $0x100] sm:$0xf] %vm1386_vm3, %v1707_v5 }
  0xa5   : > { %1867 = vst.msk [vmem:[%s2651_s10 + $0x180] sm:$0xf] %vm1386_vm3, %v1739_v6  ;;  %v1100_v11 = vpop.f32.mrf.mxu2  ;;  %v1180_v12 = vpop.f32.mrf.mxu3 }
  0xa6   : > { %1388 = vst.msk [vmem:[%s2643_s7 + $0x4] sm:$0xf] %vm1386_vm3, %v1259_v7  ;;  %v1101_v15 = vadd.f32 %v2631_v40, %v1100_v11  ;;  %v1181_v16 = vadd.f32 %v2631_v40, %v1180_v12  ;;  %v943_v17 = vpop.f32.mrf.mxu0  ;;  %v1023_v18 = vpop.f32.mrf.mxu1 }
  0xa7   : > { %1772 = vst.msk [vmem:[%s2651_s10 + $0x4] sm:$0xf] %vm1386_vm3, %v1644_v8  ;;  %v944_v21 = vadd.f32 %v2631_v40, %v943_v17  ;;  %v1024_v22 = vadd.f32 %v2631_v40, %v1023_v18 }
  0xa8   : > { %1420 = vst.msk [vmem:[%s2643_s7 + $0x84] sm:$0xf] %vm1386_vm3, %v1291_v9  ;;  %v1323_v23 = vpack.c.bf16 %v1101_v15, %v1101_v15  ;;  %v1580_v24 = vmax.f32 %v1101_v15, 0.0  ;;  %v1355_v25 = vpack.c.bf16 %v1181_v16, %v1181_v16  ;;  %v1612_v26 = vmax.f32 %v1181_v16, 0.0 }
  0xa9   : > { %1804 = vst.msk [vmem:[%s2651_s10 + $0x84] sm:$0xf] %vm1386_vm3, %v1676_v10  ;;  %v1517_v27 = vmax.f32 %v944_v21, 0.0  ;;  %v1549_v28 = vmax.f32 %v1024_v22, 0.0  ;;  %2320 = vmatmul.msk.bf16.gmra.mxu0 %vm729_vm2, %v2389_v13  ;;  %2336 = vmatmul.msk.bf16.gmra.mxu1 %vm729_vm2, %v2405_v14  ;;  %v1260_v31 = vpack.c.bf16 %v944_v21, %v944_v21  ;;  %v1292_v33 = vpack.c.bf16 %v1024_v22, %v1024_v22 }
  0xaa   : > { %1452 = vst.msk [vmem:[%s2643_s7 + $0x104] sm:$0xf] %vm1386_vm3, %v1323_v23  ;;  %v1708_v29 = vpack.c.bf16 %v1580_v24, %v1580_v24  ;;  %v1740_v30 = vpack.c.bf16 %v1612_v26, %v1612_v26  ;;  %2352 = vmatmul.msk.bf16.gmra.mxu2 %vm729_vm2, %v2421_v19  ;;  %2368 = vmatmul.msk.bf16.gmra.mxu3 %vm729_vm2, %v2437_v20 }
  0xab   : > { %1484 = vst.msk [vmem:[%s2643_s7 + $0x184] sm:$0xf] %vm1386_vm3, %v1355_v25  ;;  %v1645_v32 = vpack.c.bf16 %v1517_v27, %v1517_v27  ;;  %v1677_v34 = vpack.c.bf16 %v1549_v28, %v1549_v28 }
  0xac   : > { %1836 = vst.msk [vmem:[%s2651_s10 + $0x104] sm:$0xf] %vm1386_vm3, %v1708_v29 }
  0xad   : > { %1868 = vst.msk [vmem:[%s2651_s10 + $0x184] sm:$0xf] %vm1386_vm3, %v1740_v30  ;;  %v1103_v35 = vpop.f32.mrf.mxu2  ;;  %v1183_v36 = vpop.f32.mrf.mxu3 }
  0xae   : > { %1389 = vst.msk [vmem:[%s2643_s7 + $0x8] sm:$0xf] %vm1386_vm3, %v1260_v31  ;;  %v1104_v37 = vadd.f32 %v2631_v40, %v1103_v35  ;;  %v1184_v38 = vadd.f32 %v2631_v40, %v1183_v36  ;;  %v945_v39 = vpop.f32.mrf.mxu0  ;;  %v1025_v41 = vpop.f32.mrf.mxu1 }
  0xaf   : > { %1773 = vst.msk [vmem:[%s2651_s10 + $0x8] sm:$0xf] %vm1386_vm3, %v1645_v32  ;;  %v946_v42 = vadd.f32 %v2631_v40, %v945_v39  ;;  %v1026_v43 = vadd.f32 %v2631_v40, %v1025_v41  ;;  %v2407_v39 = vld [vmem:[%s2562_s28 + $0xd8] sm:$0xff] }
  0xb0   : > { %1421 = vst.msk [vmem:[%s2643_s7 + $0x88] sm:$0xf] %vm1386_vm3, %v1292_v33  ;;  %v1324_v44 = vpack.c.bf16 %v1104_v37, %v1104_v37  ;;  %v1581_v45 = vmax.f32 %v1104_v37, 0.0  ;;  %v1356_v46 = vpack.c.bf16 %v1184_v38, %v1184_v38  ;;  %v1613_v47 = vmax.f32 %v1184_v38, 0.0  ;;  %v2391_v38 = vld [vmem:[%s2562_s28 + $0x58] sm:$0xff] }
  0xb1   : > { %1805 = vst.msk [vmem:[%s2651_s10 + $0x88] sm:$0xf] %vm1386_vm3, %v1677_v34  ;;  %v1518_v48 = vmax.f32 %v946_v42, 0.0  ;;  %v1550_v49 = vmax.f32 %v1026_v43, 0.0  ;;  %v1261_v52 = vpack.c.bf16 %v946_v42, %v946_v42  ;;  %v1293_v54 = vpack.c.bf16 %v1026_v43, %v1026_v43 }
  0xb2   : > { %1453 = vst.msk [vmem:[%s2643_s7 + $0x108] sm:$0xf] %vm1386_vm3, %v1324_v44  ;;  %v1709_v50 = vpack.c.bf16 %v1581_v45, %v1581_v45  ;;  %v1741_v51 = vpack.c.bf16 %v1613_v47, %v1613_v47  ;;  %v2423_v45 = vld [vmem:[%s2562_s28 + $0x158] sm:$0xff] }
  0xb3   : > { %1485 = vst.msk [vmem:[%s2643_s7 + $0x188] sm:$0xf] %vm1386_vm3, %v1356_v46  ;;  %v1646_v53 = vpack.c.bf16 %v1518_v48, %v1518_v48  ;;  %v1678_v55 = vpack.c.bf16 %v1550_v49, %v1550_v49  ;;  %v2439_v46 = vld [vmem:[%s2562_s28 + $0x1d8] sm:$0xff] }
  0xb4   : > { %1837 = vst.msk [vmem:[%s2651_s10 + $0x108] sm:$0xf] %vm1386_vm3, %v1709_v50 }
  0xb5   : > { %1869 = vst.msk [vmem:[%s2651_s10 + $0x188] sm:$0xf] %vm1386_vm3, %v1741_v51  ;;  %v1105_v56 = vpop.f32.mrf.mxu2  ;;  %v1185_v57 = vpop.f32.mrf.mxu3 }
  0xb6   : > { %1390 = vst.msk [vmem:[%s2643_s7 + $0xc] sm:$0xf] %vm1386_vm3, %v1261_v52  ;;  %v1106_v60 = vadd.f32 %v2631_v40, %v1105_v56  ;;  %v1186_v61 = vadd.f32 %v2631_v40, %v1185_v57  ;;  %v948_v62 = vpop.f32.mrf.mxu0  ;;  %v1028_v63 = vpop.f32.mrf.mxu1 }
  0xb7   : > { %1774 = vst.msk [vmem:[%s2651_s10 + $0xc] sm:$0xf] %vm1386_vm3, %v1646_v53  ;;  %v949_v2 = vadd.f32 %v2631_v40, %v948_v62  ;;  %v1029_v3 = vadd.f32 %v2631_v40, %v1028_v63 }
  0xb8   : > { %1422 = vst.msk [vmem:[%s2643_s7 + $0x8c] sm:$0xf] %vm1386_vm3, %v1293_v54  ;;  %v1325_v4 = vpack.c.bf16 %v1106_v60, %v1106_v60  ;;  %v1582_v5 = vmax.f32 %v1106_v60, 0.0  ;;  %v1357_v6 = vpack.c.bf16 %v1186_v61, %v1186_v61  ;;  %v1614_v7 = vmax.f32 %v1186_v61, 0.0 }
  0xb9   : > { %1806 = vst.msk [vmem:[%s2651_s10 + $0x8c] sm:$0xf] %vm1386_vm3, %v1678_v55  ;;  %v1519_v8 = vmax.f32 %v949_v2, 0.0  ;;  %v1551_v9 = vmax.f32 %v1029_v3, 0.0  ;;  %2321 = vmatmul.msk.bf16.gmra.mxu0 %vm729_vm2, %v2390_v58  ;;  %2337 = vmatmul.msk.bf16.gmra.mxu1 %vm729_vm2, %v2406_v59  ;;  %v1262_v12 = vpack.c.bf16 %v949_v2, %v949_v2  ;;  %v1294_v14 = vpack.c.bf16 %v1029_v3, %v1029_v3 }
  0xba   : > { %1454 = vst.msk [vmem:[%s2643_s7 + $0x10c] sm:$0xf] %vm1386_vm3, %v1325_v4  ;;  %v1710_v10 = vpack.c.bf16 %v1582_v5, %v1582_v5  ;;  %v1742_v11 = vpack.c.bf16 %v1614_v7, %v1614_v7  ;;  %2353 = vmatmul.msk.bf16.gmra.mxu2 %vm729_vm2, %v2422_v0  ;;  %2369 = vmatmul.msk.bf16.gmra.mxu3 %vm729_vm2, %v2438_v1 }
  0xbb   : > { %1486 = vst.msk [vmem:[%s2643_s7 + $0x18c] sm:$0xf] %vm1386_vm3, %v1357_v6  ;;  %v1647_v13 = vpack.c.bf16 %v1519_v8, %v1519_v8  ;;  %v1679_v15 = vpack.c.bf16 %v1551_v9, %v1551_v9 }
  0xbc   : > { %1838 = vst.msk [vmem:[%s2651_s10 + $0x10c] sm:$0xf] %vm1386_vm3, %v1710_v10 }
  0xbd   : > { %1870 = vst.msk [vmem:[%s2651_s10 + $0x18c] sm:$0xf] %vm1386_vm3, %v1742_v11  ;;  %v1108_v16 = vpop.f32.mrf.mxu2  ;;  %v1188_v17 = vpop.f32.mrf.mxu3 }
  0xbe   : > { %1391 = vst.msk [vmem:[%s2643_s7 + $0x10] sm:$0xf] %vm1386_vm3, %v1262_v12  ;;  %v1109_v18 = vadd.f32 %v2631_v40, %v1108_v16  ;;  %v1189_v19 = vadd.f32 %v2631_v40, %v1188_v17  ;;  %v950_v20 = vpop.f32.mrf.mxu0  ;;  %v1030_v21 = vpop.f32.mrf.mxu1 }
  0xbf   : > { %1775 = vst.msk [vmem:[%s2651_s10 + $0x10] sm:$0xf] %vm1386_vm3, %v1647_v13  ;;  %v951_v22 = vadd.f32 %v2631_v40, %v950_v20  ;;  %v1031_v23 = vadd.f32 %v2631_v40, %v1030_v21  ;;  %v2408_v20 = vld [vmem:[%s2562_s28 + $0xe0] sm:$0xff] }
  0xc0   : > { %1423 = vst.msk [vmem:[%s2643_s7 + $0x90] sm:$0xf] %vm1386_vm3, %v1294_v14  ;;  %v1326_v24 = vpack.c.bf16 %v1109_v18, %v1109_v18  ;;  %v1583_v25 = vmax.f32 %v1109_v18, 0.0  ;;  %v1358_v26 = vpack.c.bf16 %v1189_v19, %v1189_v19  ;;  %v1615_v27 = vmax.f32 %v1189_v19, 0.0  ;;  %v2392_v19 = vld [vmem:[%s2562_s28 + $0x60] sm:$0xff] }
  0xc1   : > { %1807 = vst.msk [vmem:[%s2651_s10 + $0x90] sm:$0xf] %vm1386_vm3, %v1679_v15  ;;  %v1520_v28 = vmax.f32 %v951_v22, 0.0  ;;  %v1552_v29 = vmax.f32 %v1031_v23, 0.0  ;;  %v1263_v32 = vpack.c.bf16 %v951_v22, %v951_v22  ;;  %v1295_v34 = vpack.c.bf16 %v1031_v23, %v1031_v23 }
  0xc2   : > { %1455 = vst.msk [vmem:[%s2643_s7 + $0x110] sm:$0xf] %vm1386_vm3, %v1326_v24  ;;  %v1711_v30 = vpack.c.bf16 %v1583_v25, %v1583_v25  ;;  %v1743_v31 = vpack.c.bf16 %v1615_v27, %v1615_v27  ;;  %v2424_v25 = vld [vmem:[%s2562_s28 + $0x160] sm:$0xff] }
  0xc3   : > { %1487 = vst.msk [vmem:[%s2643_s7 + $0x190] sm:$0xf] %vm1386_vm3, %v1358_v26  ;;  %v1648_v33 = vpack.c.bf16 %v1520_v28, %v1520_v28  ;;  %v1680_v35 = vpack.c.bf16 %v1552_v29, %v1552_v29  ;;  %v2440_v26 = vld [vmem:[%s2562_s28 + $0x1e0] sm:$0xff] }
  0xc4   : > { %1839 = vst.msk [vmem:[%s2651_s10 + $0x110] sm:$0xf] %vm1386_vm3, %v1711_v30 }
  0xc5   : > { %1871 = vst.msk [vmem:[%s2651_s10 + $0x190] sm:$0xf] %vm1386_vm3, %v1743_v31  ;;  %v1110_v36 = vpop.f32.mrf.mxu2  ;;  %v1190_v37 = vpop.f32.mrf.mxu3 }
  0xc6   : > { %1392 = vst.msk [vmem:[%s2643_s7 + $0x14] sm:$0xf] %vm1386_vm3, %v1263_v32  ;;  %v1111_v41 = vadd.f32 %v2631_v40, %v1110_v36  ;;  %v1191_v42 = vadd.f32 %v2631_v40, %v1190_v37  ;;  %v953_v43 = vpop.f32.mrf.mxu0  ;;  %v1033_v44 = vpop.f32.mrf.mxu1 }
  0xc7   : > { %1776 = vst.msk [vmem:[%s2651_s10 + $0x14] sm:$0xf] %vm1386_vm3, %v1648_v33  ;;  %v954_v47 = vadd.f32 %v2631_v40, %v953_v43  ;;  %v1034_v48 = vadd.f32 %v2631_v40, %v1033_v44 }
  0xc8   : > { %1424 = vst.msk [vmem:[%s2643_s7 + $0x94] sm:$0xf] %vm1386_vm3, %v1295_v34  ;;  %v1327_v49 = vpack.c.bf16 %v1111_v41, %v1111_v41  ;;  %v1584_v50 = vmax.f32 %v1111_v41, 0.0  ;;  %v1359_v51 = vpack.c.bf16 %v1191_v42, %v1191_v42  ;;  %v1616_v52 = vmax.f32 %v1191_v42, 0.0 }
  0xc9   : > { %1808 = vst.msk [vmem:[%s2651_s10 + $0x94] sm:$0xf] %vm1386_vm3, %v1680_v35  ;;  %v1521_v53 = vmax.f32 %v954_v47, 0.0  ;;  %v1553_v54 = vmax.f32 %v1034_v48, 0.0  ;;  %2322 = vmatmul.msk.bf16.gmra.mxu0 %vm729_vm2, %v2391_v38  ;;  %2338 = vmatmul.msk.bf16.gmra.mxu1 %vm729_vm2, %v2407_v39  ;;  %v1264_v57 = vpack.c.bf16 %v954_v47, %v954_v47  ;;  %v1296_v59 = vpack.c.bf16 %v1034_v48, %v1034_v48 }
  0xca   : > { %1456 = vst.msk [vmem:[%s2643_s7 + $0x114] sm:$0xf] %vm1386_vm3, %v1327_v49  ;;  %v1712_v55 = vpack.c.bf16 %v1584_v50, %v1584_v50  ;;  %v1744_v56 = vpack.c.bf16 %v1616_v52, %v1616_v52  ;;  %2354 = vmatmul.msk.bf16.gmra.mxu2 %vm729_vm2, %v2423_v45  ;;  %2370 = vmatmul.msk.bf16.gmra.mxu3 %vm729_vm2, %v2439_v46 }
  0xcb   : > { %1488 = vst.msk [vmem:[%s2643_s7 + $0x194] sm:$0xf] %vm1386_vm3, %v1359_v51  ;;  %v1649_v58 = vpack.c.bf16 %v1521_v53, %v1521_v53  ;;  %v1681_v60 = vpack.c.bf16 %v1553_v54, %v1553_v54 }
  0xcc   : > { %1840 = vst.msk [vmem:[%s2651_s10 + $0x114] sm:$0xf] %vm1386_vm3, %v1712_v55 }
  0xcd   : > { %1872 = vst.msk [vmem:[%s2651_s10 + $0x194] sm:$0xf] %vm1386_vm3, %v1744_v56  ;;  %v1113_v61 = vpop.f32.mrf.mxu2  ;;  %v1193_v62 = vpop.f32.mrf.mxu3 }
  0xce   : > { %1393 = vst.msk [vmem:[%s2643_s7 + $0x18] sm:$0xf] %vm1386_vm3, %v1264_v57  ;;  %v1114_v63 = vadd.f32 %v2631_v40, %v1113_v61  ;;  %v1194_v0 = vadd.f32 %v2631_v40, %v1193_v62  ;;  %v955_v1 = vpop.f32.mrf.mxu0  ;;  %v1035_v2 = vpop.f32.mrf.mxu1 }
  0xcf   : > { %1777 = vst.msk [vmem:[%s2651_s10 + $0x18] sm:$0xf] %vm1386_vm3, %v1649_v58  ;;  %v956_v3 = vadd.f32 %v2631_v40, %v955_v1  ;;  %v1036_v4 = vadd.f32 %v2631_v40, %v1035_v2  ;;  %v2409_v1 = vld [vmem:[%s2562_s28 + $0xe8] sm:$0xff] }
  0xd0   : > { %1425 = vst.msk [vmem:[%s2643_s7 + $0x98] sm:$0xf] %vm1386_vm3, %v1296_v59  ;;  %v1328_v5 = vpack.c.bf16 %v1114_v63, %v1114_v63  ;;  %v1585_v6 = vmax.f32 %v1114_v63, 0.0  ;;  %v1360_v7 = vpack.c.bf16 %v1194_v0, %v1194_v0  ;;  %v1617_v8 = vmax.f32 %v1194_v0, 0.0  ;;  %v2393_v0 = vld [vmem:[%s2562_s28 + $0x68] sm:$0xff] }
  0xd1   : > { %1809 = vst.msk [vmem:[%s2651_s10 + $0x98] sm:$0xf] %vm1386_vm3, %v1681_v60  ;;  %v1522_v9 = vmax.f32 %v956_v3, 0.0  ;;  %v1554_v10 = vmax.f32 %v1036_v4, 0.0  ;;  %v1265_v13 = vpack.c.bf16 %v956_v3, %v956_v3  ;;  %v1297_v15 = vpack.c.bf16 %v1036_v4, %v1036_v4 }
  0xd2   : > { %1457 = vst.msk [vmem:[%s2643_s7 + $0x118] sm:$0xf] %vm1386_vm3, %v1328_v5  ;;  %v1713_v11 = vpack.c.bf16 %v1585_v6, %v1585_v6  ;;  %v1745_v12 = vpack.c.bf16 %v1617_v8, %v1617_v8  ;;  %v2425_v6 = vld [vmem:[%s2562_s28 + $0x168] sm:$0xff] }
  0xd3   : > { %1489 = vst.msk [vmem:[%s2643_s7 + $0x198] sm:$0xf] %vm1386_vm3, %v1360_v7  ;;  %v1650_v14 = vpack.c.bf16 %v1522_v9, %v1522_v9  ;;  %v1682_v16 = vpack.c.bf16 %v1554_v10, %v1554_v10  ;;  %v2441_v7 = vld [vmem:[%s2562_s28 + $0x1e8] sm:$0xff] }
  0xd4   : > { %1841 = vst.msk [vmem:[%s2651_s10 + $0x118] sm:$0xf] %vm1386_vm3, %v1713_v11 }
  0xd5   : > { %1873 = vst.msk [vmem:[%s2651_s10 + $0x198] sm:$0xf] %vm1386_vm3, %v1745_v12  ;;  %v1115_v17 = vpop.f32.mrf.mxu2  ;;  %v1195_v18 = vpop.f32.mrf.mxu3 }
  0xd6   : > { %1394 = vst.msk [vmem:[%s2643_s7 + $0x1c] sm:$0xf] %vm1386_vm3, %v1265_v13  ;;  %v1116_v21 = vadd.f32 %v2631_v40, %v1115_v17  ;;  %v1196_v22 = vadd.f32 %v2631_v40, %v1195_v18  ;;  %v958_v23 = vpop.f32.mrf.mxu0  ;;  %v1038_v24 = vpop.f32.mrf.mxu1 }
  0xd7   : > { %1778 = vst.msk [vmem:[%s2651_s10 + $0x1c] sm:$0xf] %vm1386_vm3, %v1650_v14  ;;  %v959_v27 = vadd.f32 %v2631_v40, %v958_v23  ;;  %v1039_v28 = vadd.f32 %v2631_v40, %v1038_v24 }
  0xd8   : > { %1426 = vst.msk [vmem:[%s2643_s7 + $0x9c] sm:$0xf] %vm1386_vm3, %v1297_v15  ;;  %v1329_v29 = vpack.c.bf16 %v1116_v21, %v1116_v21  ;;  %v1586_v30 = vmax.f32 %v1116_v21, 0.0  ;;  %v1361_v31 = vpack.c.bf16 %v1196_v22, %v1196_v22  ;;  %v1618_v32 = vmax.f32 %v1196_v22, 0.0 }
  0xd9   : > { %1810 = vst.msk [vmem:[%s2651_s10 + $0x9c] sm:$0xf] %vm1386_vm3, %v1682_v16  ;;  %v1523_v33 = vmax.f32 %v959_v27, 0.0  ;;  %v1555_v34 = vmax.f32 %v1039_v28, 0.0  ;;  %2323 = vmatmul.msk.bf16.gmra.mxu0 %vm729_vm2, %v2392_v19  ;;  %2339 = vmatmul.msk.bf16.gmra.mxu1 %vm729_vm2, %v2408_v20  ;;  %v1266_v37 = vpack.c.bf16 %v959_v27, %v959_v27  ;;  %v1298_v39 = vpack.c.bf16 %v1039_v28, %v1039_v28 }
  0xda   : > { %1458 = vst.msk [vmem:[%s2643_s7 + $0x11c] sm:$0xf] %vm1386_vm3, %v1329_v29  ;;  %v1714_v35 = vpack.c.bf16 %v1586_v30, %v1586_v30  ;;  %v1746_v36 = vpack.c.bf16 %v1618_v32, %v1618_v32  ;;  %2355 = vmatmul.msk.bf16.gmra.mxu2 %vm729_vm2, %v2424_v25  ;;  %2371 = vmatmul.msk.bf16.gmra.mxu3 %vm729_vm2, %v2440_v26 }
  0xdb   : > { %1490 = vst.msk [vmem:[%s2643_s7 + $0x19c] sm:$0xf] %vm1386_vm3, %v1361_v31  ;;  %v1651_v38 = vpack.c.bf16 %v1523_v33, %v1523_v33  ;;  %v1683_v41 = vpack.c.bf16 %v1555_v34, %v1555_v34 }
  0xdc   : > { %1842 = vst.msk [vmem:[%s2651_s10 + $0x11c] sm:$0xf] %vm1386_vm3, %v1714_v35 }
  0xdd   : > { %1874 = vst.msk [vmem:[%s2651_s10 + $0x19c] sm:$0xf] %vm1386_vm3, %v1746_v36  ;;  %v1118_v42 = vpop.f32.mrf.mxu2  ;;  %v1198_v43 = vpop.f32.mrf.mxu3 }
  0xde   : > { %1395 = vst.msk [vmem:[%s2643_s7 + $0x20] sm:$0xf] %vm1386_vm3, %v1266_v37  ;;  %v1119_v44 = vadd.f32 %v2631_v40, %v1118_v42  ;;  %v1199_v45 = vadd.f32 %v2631_v40, %v1198_v43  ;;  %v960_v46 = vpop.f32.mrf.mxu0  ;;  %v1040_v47 = vpop.f32.mrf.mxu1 }
  0xdf   : > { %1779 = vst.msk [vmem:[%s2651_s10 + $0x20] sm:$0xf] %vm1386_vm3, %v1651_v38  ;;  %v961_v48 = vadd.f32 %v2631_v40, %v960_v46  ;;  %v1041_v49 = vadd.f32 %v2631_v40, %v1040_v47  ;;  %v2410_v46 = vld [vmem:[%s2562_s28 + $0xf0] sm:$0xff] }
  0xe0   : > { %1427 = vst.msk [vmem:[%s2643_s7 + $0xa0] sm:$0xf] %vm1386_vm3, %v1298_v39  ;;  %v1330_v50 = vpack.c.bf16 %v1119_v44, %v1119_v44  ;;  %v1587_v51 = vmax.f32 %v1119_v44, 0.0  ;;  %v1362_v52 = vpack.c.bf16 %v1199_v45, %v1199_v45  ;;  %v1619_v53 = vmax.f32 %v1199_v45, 0.0  ;;  %v2394_v45 = vld [vmem:[%s2562_s28 + $0x70] sm:$0xff] }
  0xe1   : > { %1811 = vst.msk [vmem:[%s2651_s10 + $0xa0] sm:$0xf] %vm1386_vm3, %v1683_v41  ;;  %v1524_v54 = vmax.f32 %v961_v48, 0.0  ;;  %v1556_v55 = vmax.f32 %v1041_v49, 0.0  ;;  %v1267_v58 = vpack.c.bf16 %v961_v48, %v961_v48  ;;  %v1299_v60 = vpack.c.bf16 %v1041_v49, %v1041_v49 }
  0xe2   : > { %1459 = vst.msk [vmem:[%s2643_s7 + $0x120] sm:$0xf] %vm1386_vm3, %v1330_v50  ;;  %v1715_v56 = vpack.c.bf16 %v1587_v51, %v1587_v51  ;;  %v1747_v57 = vpack.c.bf16 %v1619_v53, %v1619_v53  ;;  %v2426_v51 = vld [vmem:[%s2562_s28 + $0x170] sm:$0xff] }
  0xe3   : > { %1491 = vst.msk [vmem:[%s2643_s7 + $0x1a0] sm:$0xf] %vm1386_vm3, %v1362_v52  ;;  %v1652_v59 = vpack.c.bf16 %v1524_v54, %v1524_v54  ;;  %v1684_v61 = vpack.c.bf16 %v1556_v55, %v1556_v55  ;;  %v2442_v52 = vld [vmem:[%s2562_s28 + $0x1f0] sm:$0xff] }
  0xe4   : > { %1843 = vst.msk [vmem:[%s2651_s10 + $0x120] sm:$0xf] %vm1386_vm3, %v1715_v56 }
  0xe5   : > { %1875 = vst.msk [vmem:[%s2651_s10 + $0x1a0] sm:$0xf] %vm1386_vm3, %v1747_v57  ;;  %v1120_v62 = vpop.f32.mrf.mxu2  ;;  %v1200_v63 = vpop.f32.mrf.mxu3 }
  0xe6   : > { %1396 = vst.msk [vmem:[%s2643_s7 + $0x24] sm:$0xf] %vm1386_vm3, %v1267_v58  ;;  %v1121_v2 = vadd.f32 %v2631_v40, %v1120_v62  ;;  %v1201_v3 = vadd.f32 %v2631_v40, %v1200_v63  ;;  %v963_v4 = vpop.f32.mrf.mxu0  ;;  %v1043_v5 = vpop.f32.mrf.mxu1 }
  0xe7   : > { %1780 = vst.msk [vmem:[%s2651_s10 + $0x24] sm:$0xf] %vm1386_vm3, %v1652_v59  ;;  %v964_v8 = vadd.f32 %v2631_v40, %v963_v4  ;;  %v1044_v9 = vadd.f32 %v2631_v40, %v1043_v5 }
  0xe8   : > { %1428 = vst.msk [vmem:[%s2643_s7 + $0xa4] sm:$0xf] %vm1386_vm3, %v1299_v60  ;;  %v1331_v10 = vpack.c.bf16 %v1121_v2, %v1121_v2  ;;  %v1588_v11 = vmax.f32 %v1121_v2, 0.0  ;;  %v1363_v12 = vpack.c.bf16 %v1201_v3, %v1201_v3  ;;  %v1620_v13 = vmax.f32 %v1201_v3, 0.0 }
  0xe9   : > { %1812 = vst.msk [vmem:[%s2651_s10 + $0xa4] sm:$0xf] %vm1386_vm3, %v1684_v61  ;;  %v1525_v14 = vmax.f32 %v964_v8, 0.0  ;;  %v1557_v15 = vmax.f32 %v1044_v9, 0.0  ;;  %2324 = vmatmul.msk.bf16.gmra.mxu0 %vm729_vm2, %v2393_v0  ;;  %2340 = vmatmul.msk.bf16.gmra.mxu1 %vm729_vm2, %v2409_v1  ;;  %v1268_v18 = vpack.c.bf16 %v964_v8, %v964_v8  ;;  %v1300_v20 = vpack.c.bf16 %v1044_v9, %v1044_v9 }
  0xea   : > { %1460 = vst.msk [vmem:[%s2643_s7 + $0x124] sm:$0xf] %vm1386_vm3, %v1331_v10  ;;  %v1716_v16 = vpack.c.bf16 %v1588_v11, %v1588_v11  ;;  %v1748_v17 = vpack.c.bf16 %v1620_v13, %v1620_v13  ;;  %2356 = vmatmul.msk.bf16.gmra.mxu2 %vm729_vm2, %v2425_v6  ;;  %2372 = vmatmul.msk.bf16.gmra.mxu3 %vm729_vm2, %v2441_v7 }
  0xeb   : > { %1492 = vst.msk [vmem:[%s2643_s7 + $0x1a4] sm:$0xf] %vm1386_vm3, %v1363_v12  ;;  %v1653_v19 = vpack.c.bf16 %v1525_v14, %v1525_v14  ;;  %v1685_v21 = vpack.c.bf16 %v1557_v15, %v1557_v15 }
  0xec   : > { %1844 = vst.msk [vmem:[%s2651_s10 + $0x124] sm:$0xf] %vm1386_vm3, %v1716_v16 }
  0xed   : > { %1876 = vst.msk [vmem:[%s2651_s10 + $0x1a4] sm:$0xf] %vm1386_vm3, %v1748_v17  ;;  %v1123_v22 = vpop.f32.mrf.mxu2  ;;  %v1203_v23 = vpop.f32.mrf.mxu3 }
  0xee   : > { %1397 = vst.msk [vmem:[%s2643_s7 + $0x28] sm:$0xf] %vm1386_vm3, %v1268_v18  ;;  %v1124_v24 = vadd.f32 %v2631_v40, %v1123_v22  ;;  %v1204_v25 = vadd.f32 %v2631_v40, %v1203_v23  ;;  %v965_v26 = vpop.f32.mrf.mxu0  ;;  %v1045_v27 = vpop.f32.mrf.mxu1 }
  0xef   : > { %1781 = vst.msk [vmem:[%s2651_s10 + $0x28] sm:$0xf] %vm1386_vm3, %v1653_v19  ;;  %v966_v28 = vadd.f32 %v2631_v40, %v965_v26  ;;  %v1046_v29 = vadd.f32 %v2631_v40, %v1045_v27  ;;  %v2411_v26 = vld [vmem:[%s2562_s28 + $0xf8] sm:$0xff] }
  0xf0   : > { %1429 = vst.msk [vmem:[%s2643_s7 + $0xa8] sm:$0xf] %vm1386_vm3, %v1300_v20  ;;  %v1332_v30 = vpack.c.bf16 %v1124_v24, %v1124_v24  ;;  %v1589_v31 = vmax.f32 %v1124_v24, 0.0  ;;  %v1364_v32 = vpack.c.bf16 %v1204_v25, %v1204_v25  ;;  %v1621_v33 = vmax.f32 %v1204_v25, 0.0  ;;  %v2395_v25 = vld [vmem:[%s2562_s28 + $0x78] sm:$0xff] }
  0xf1   : > { %1813 = vst.msk [vmem:[%s2651_s10 + $0xa8] sm:$0xf] %vm1386_vm3, %v1685_v21  ;;  %v1526_v34 = vmax.f32 %v966_v28, 0.0  ;;  %v1558_v35 = vmax.f32 %v1046_v29, 0.0  ;;  %v1269_v38 = vpack.c.bf16 %v966_v28, %v966_v28  ;;  %v1301_v41 = vpack.c.bf16 %v1046_v29, %v1046_v29 }
  0xf2   : > { %1461 = vst.msk [vmem:[%s2643_s7 + $0x128] sm:$0xf] %vm1386_vm3, %v1332_v30  ;;  %v1717_v36 = vpack.c.bf16 %v1589_v31, %v1589_v31  ;;  %v1749_v37 = vpack.c.bf16 %v1621_v33, %v1621_v33  ;;  %v2427_v31 = vld [vmem:[%s2562_s28 + $0x178] sm:$0xff] }
  0xf3   : > { %1493 = vst.msk [vmem:[%s2643_s7 + $0x1a8] sm:$0xf] %vm1386_vm3, %v1364_v32  ;;  %v1654_v39 = vpack.c.bf16 %v1526_v34, %v1526_v34  ;;  %v1686_v42 = vpack.c.bf16 %v1558_v35, %v1558_v35  ;;  %v2443_v32 = vld [vmem:[%s2562_s28 + $0x1f8] sm:$0xff] }
  0xf4   : > { %1845 = vst.msk [vmem:[%s2651_s10 + $0x128] sm:$0xf] %vm1386_vm3, %v1717_v36 }
  0xf5   : > { %1877 = vst.msk [vmem:[%s2651_s10 + $0x1a8] sm:$0xf] %vm1386_vm3, %v1749_v37  ;;  %v1125_v43 = vpop.f32.mrf.mxu2  ;;  %v1205_v44 = vpop.f32.mrf.mxu3 }
  0xf6   : > { %1398 = vst.msk [vmem:[%s2643_s7 + $0x2c] sm:$0xf] %vm1386_vm3, %v1269_v38  ;;  %v1126_v47 = vadd.f32 %v2631_v40, %v1125_v43  ;;  %v1206_v48 = vadd.f32 %v2631_v40, %v1205_v44  ;;  %v968_v49 = vpop.f32.mrf.mxu0  ;;  %v1048_v50 = vpop.f32.mrf.mxu1 }
  0xf7   : > { %1782 = vst.msk [vmem:[%s2651_s10 + $0x2c] sm:$0xf] %vm1386_vm3, %v1654_v39  ;;  %v969_v53 = vadd.f32 %v2631_v40, %v968_v49  ;;  %v1049_v54 = vadd.f32 %v2631_v40, %v1048_v50 }
  0xf8   : > { %1430 = vst.msk [vmem:[%s2643_s7 + $0xac] sm:$0xf] %vm1386_vm3, %v1301_v41  ;;  %v1333_v55 = vpack.c.bf16 %v1126_v47, %v1126_v47  ;;  %v1590_v56 = vmax.f32 %v1126_v47, 0.0  ;;  %v1365_v57 = vpack.c.bf16 %v1206_v48, %v1206_v48  ;;  %v1622_v58 = vmax.f32 %v1206_v48, 0.0 }
  0xf9   : > { %1814 = vst.msk [vmem:[%s2651_s10 + $0xac] sm:$0xf] %vm1386_vm3, %v1686_v42  ;;  %v1527_v59 = vmax.f32 %v969_v53, 0.0  ;;  %v1559_v60 = vmax.f32 %v1049_v54, 0.0  ;;  %2325 = vmatmul.msk.bf16.gmra.mxu0 %vm729_vm2, %v2394_v45  ;;  %2341 = vmatmul.msk.bf16.gmra.mxu1 %vm729_vm2, %v2410_v46  ;;  %v1270_v63 = vpack.c.bf16 %v969_v53, %v969_v53  ;;  %v1302_v1 = vpack.c.bf16 %v1049_v54, %v1049_v54 }
  0xfa   : > { %1462 = vst.msk [vmem:[%s2643_s7 + $0x12c] sm:$0xf] %vm1386_vm3, %v1333_v55  ;;  %v1718_v61 = vpack.c.bf16 %v1590_v56, %v1590_v56  ;;  %v1750_v62 = vpack.c.bf16 %v1622_v58, %v1622_v58  ;;  %2357 = vmatmul.msk.bf16.gmra.mxu2 %vm729_vm2, %v2426_v51  ;;  %2373 = vmatmul.msk.bf16.gmra.mxu3 %vm729_vm2, %v2442_v52 }
  0xfb   : > { %1494 = vst.msk [vmem:[%s2643_s7 + $0x1ac] sm:$0xf] %vm1386_vm3, %v1365_v57  ;;  %v1655_v0 = vpack.c.bf16 %v1527_v59, %v1527_v59  ;;  %v1687_v2 = vpack.c.bf16 %v1559_v60, %v1559_v60 }
  0xfc   : > { %1846 = vst.msk [vmem:[%s2651_s10 + $0x12c] sm:$0xf] %vm1386_vm3, %v1718_v61 }
  0xfd   : > { %1878 = vst.msk [vmem:[%s2651_s10 + $0x1ac] sm:$0xf] %vm1386_vm3, %v1750_v62  ;;  %v1128_v3 = vpop.f32.mrf.mxu2  ;;  %v1208_v4 = vpop.f32.mrf.mxu3 }
  0xfe   : > { %1399 = vst.msk [vmem:[%s2643_s7 + $0x30] sm:$0xf] %vm1386_vm3, %v1270_v63  ;;  %v1129_v5 = vadd.f32 %v2631_v40, %v1128_v3  ;;  %v1209_v6 = vadd.f32 %v2631_v40, %v1208_v4  ;;  %v970_v7 = vpop.f32.mrf.mxu0  ;;  %v1050_v8 = vpop.f32.mrf.mxu1 }
  0xff   : > { %1783 = vst.msk [vmem:[%s2651_s10 + $0x30] sm:$0xf] %vm1386_vm3, %v1655_v0  ;;  %v971_v9 = vadd.f32 %v2631_v40, %v970_v7  ;;  %v1051_v10 = vadd.f32 %v2631_v40, %v1050_v8 }
 0x100   : > { %1431 = vst.msk [vmem:[%s2643_s7 + $0xb0] sm:$0xf] %vm1386_vm3, %v1302_v1  ;;  %v1334_v11 = vpack.c.bf16 %v1129_v5, %v1129_v5  ;;  %v1591_v12 = vmax.f32 %v1129_v5, 0.0  ;;  %v1366_v13 = vpack.c.bf16 %v1209_v6, %v1209_v6  ;;  %v1623_v14 = vmax.f32 %v1209_v6, 0.0 }
 0x101   : > { %1815 = vst.msk [vmem:[%s2651_s10 + $0xb0] sm:$0xf] %vm1386_vm3, %v1687_v2  ;;  %v1528_v15 = vmax.f32 %v971_v9, 0.0  ;;  %v1560_v16 = vmax.f32 %v1051_v10, 0.0  ;;  %v1271_v19 = vpack.c.bf16 %v971_v9, %v971_v9  ;;  %v1303_v21 = vpack.c.bf16 %v1051_v10, %v1051_v10 }
 0x102   : > { %1463 = vst.msk [vmem:[%s2643_s7 + $0x130] sm:$0xf] %vm1386_vm3, %v1334_v11  ;;  %v1719_v17 = vpack.c.bf16 %v1591_v12, %v1591_v12  ;;  %v1751_v18 = vpack.c.bf16 %v1623_v14, %v1623_v14 }
 0x103   : > { %1495 = vst.msk [vmem:[%s2643_s7 + $0x1b0] sm:$0xf] %vm1386_vm3, %v1366_v13  ;;  %v1656_v20 = vpack.c.bf16 %v1528_v15, %v1528_v15  ;;  %v1688_v22 = vpack.c.bf16 %v1560_v16, %v1560_v16 }
 0x104   : > { %1847 = vst.msk [vmem:[%s2651_s10 + $0x130] sm:$0xf] %vm1386_vm3, %v1719_v17 }
 0x105   : > { %1879 = vst.msk [vmem:[%s2651_s10 + $0x1b0] sm:$0xf] %vm1386_vm3, %v1751_v18  ;;  %v1130_v23 = vpop.f32.mrf.mxu2  ;;  %v1210_v24 = vpop.f32.mrf.mxu3 }
 0x106   : > { %1400 = vst.msk [vmem:[%s2643_s7 + $0x34] sm:$0xf] %vm1386_vm3, %v1271_v19  ;;  %v1131_v27 = vadd.f32 %v2631_v40, %v1130_v23  ;;  %v1211_v28 = vadd.f32 %v2631_v40, %v1210_v24  ;;  %v973_v29 = vpop.f32.mrf.mxu0  ;;  %v1053_v30 = vpop.f32.mrf.mxu1 }
 0x107   : > { %1784 = vst.msk [vmem:[%s2651_s10 + $0x34] sm:$0xf] %vm1386_vm3, %v1656_v20  ;;  %v974_v33 = vadd.f32 %v2631_v40, %v973_v29  ;;  %v1054_v34 = vadd.f32 %v2631_v40, %v1053_v30 }
 0x108   : > { %1432 = vst.msk [vmem:[%s2643_s7 + $0xb4] sm:$0xf] %vm1386_vm3, %v1303_v21  ;;  %v1335_v35 = vpack.c.bf16 %v1131_v27, %v1131_v27  ;;  %v1592_v36 = vmax.f32 %v1131_v27, 0.0  ;;  %v1367_v37 = vpack.c.bf16 %v1211_v28, %v1211_v28  ;;  %v1624_v38 = vmax.f32 %v1211_v28, 0.0 }
 0x109   : > { %1816 = vst.msk [vmem:[%s2651_s10 + $0xb4] sm:$0xf] %vm1386_vm3, %v1688_v22  ;;  %v1529_v39 = vmax.f32 %v974_v33, 0.0  ;;  %v1561_v41 = vmax.f32 %v1054_v34, 0.0  ;;  %2326 = vmatmul.msk.bf16.gmra.mxu0 %vm729_vm2, %v2395_v25  ;;  %2342 = vmatmul.msk.bf16.gmra.mxu1 %vm729_vm2, %v2411_v26  ;;  %v1272_v44 = vpack.c.bf16 %v974_v33, %v974_v33  ;;  %v1304_v46 = vpack.c.bf16 %v1054_v34, %v1054_v34  ;;  %v3036_v25 = vld [vmem:[%s3365_s2] ss:$0 sm:$0xff] }
 0x10a   : > { %1464 = vst.msk [vmem:[%s2643_s7 + $0x134] sm:$0xf] %vm1386_vm3, %v1335_v35  ;;  %v1720_v42 = vpack.c.bf16 %v1592_v36, %v1592_v36  ;;  %v1752_v43 = vpack.c.bf16 %v1624_v38, %v1624_v38  ;;  %2358 = vmatmul.msk.bf16.gmra.mxu2 %vm729_vm2, %v2427_v31  ;;  %2374 = vmatmul.msk.bf16.gmra.mxu3 %vm729_vm2, %v2443_v32 }
 0x10b   : > { %1496 = vst.msk [vmem:[%s2643_s7 + $0x1b4] sm:$0xf] %vm1386_vm3, %v1367_v37  ;;  %v1657_v45 = vpack.c.bf16 %v1529_v39, %v1529_v39  ;;  %v1689_v47 = vpack.c.bf16 %v1561_v41, %v1561_v41 }
 0x10c   : > { %1848 = vst.msk [vmem:[%s2651_s10 + $0x134] sm:$0xf] %vm1386_vm3, %v1720_v42 }
 0x10d   : > { %1880 = vst.msk [vmem:[%s2651_s10 + $0x1b4] sm:$0xf] %vm1386_vm3, %v1752_v43  ;;  %v1133_v48 = vpop.f32.mrf.mxu2  ;;  %v1213_v49 = vpop.f32.mrf.mxu3 }
 0x10e   : > { %1401 = vst.msk [vmem:[%s2643_s7 + $0x38] sm:$0xf] %vm1386_vm3, %v1272_v44  ;;  %v1134_v50 = vadd.f32 %v2631_v40, %v1133_v48  ;;  %v1214_v51 = vadd.f32 %v2631_v40, %v1213_v49  ;;  %v975_v52 = vpop.f32.mrf.mxu0  ;;  %v1055_v53 = vpop.f32.mrf.mxu1 }
 0x10f   : > { %1785 = vst.msk [vmem:[%s2651_s10 + $0x38] sm:$0xf] %vm1386_vm3, %v1657_v45  ;;  %v976_v54 = vadd.f32 %v2631_v40, %v975_v52  ;;  %v1056_v55 = vadd.f32 %v2631_v40, %v1055_v53 }
 0x110   : > { %1433 = vst.msk [vmem:[%s2643_s7 + $0xb8] sm:$0xf] %vm1386_vm3, %v1304_v46  ;;  %v1336_v56 = vpack.c.bf16 %v1134_v50, %v1134_v50  ;;  %v1593_v57 = vmax.f32 %v1134_v50, 0.0  ;;  %v1368_v58 = vpack.c.bf16 %v1214_v51, %v1214_v51  ;;  %v1625_v59 = vmax.f32 %v1214_v51, 0.0 }
 0x111   : > { %1817 = vst.msk [vmem:[%s2651_s10 + $0xb8] sm:$0xf] %vm1386_vm3, %v1689_v47  ;;  %v1530_v60 = vmax.f32 %v976_v54, 0.0  ;;  %v1562_v61 = vmax.f32 %v1056_v55, 0.0  ;;  %v1273_v0 = vpack.c.bf16 %v976_v54, %v976_v54  ;;  %v1305_v2 = vpack.c.bf16 %v1056_v55, %v1056_v55 }
 0x112   : > { %1465 = vst.msk [vmem:[%s2643_s7 + $0x138] sm:$0xf] %vm1386_vm3, %v1336_v56  ;;  %v1721_v62 = vpack.c.bf16 %v1593_v57, %v1593_v57  ;;  %v1753_v63 = vpack.c.bf16 %v1625_v59, %v1625_v59 }
 0x113   : > { %1497 = vst.msk [vmem:[%s2643_s7 + $0x1b8] sm:$0xf] %vm1386_vm3, %v1368_v58  ;;  %v1658_v1 = vpack.c.bf16 %v1530_v60, %v1530_v60  ;;  %v1690_v3 = vpack.c.bf16 %v1562_v61, %v1562_v61 }
 0x114   : > { %1849 = vst.msk [vmem:[%s2651_s10 + $0x138] sm:$0xf] %vm1386_vm3, %v1721_v62 }
 0x115   : > { %1881 = vst.msk [vmem:[%s2651_s10 + $0x1b8] sm:$0xf] %vm1386_vm3, %v1753_v63  ;;  %v1135_v4 = vpop.f32.mrf.mxu2  ;;  %v1215_v5 = vpop.f32.mrf.mxu3 }
 0x116   : > { %1402 = vst.msk [vmem:[%s2643_s7 + $0x3c] sm:$0xf] %vm1386_vm3, %v1273_v0  ;;  %v1136_v6 = vadd.f32 %v2631_v40, %v1135_v4  ;;  %v1216_v7 = vadd.f32 %v2631_v40, %v1215_v5  ;;  %v978_v8 = vpop.f32.mrf.mxu0  ;;  %v1058_v9 = vpop.f32.mrf.mxu1 }
 0x117   : > { %1786 = vst.msk [vmem:[%s2651_s10 + $0x3c] sm:$0xf] %vm1386_vm3, %v1658_v1  ;;  %v979_v10 = vadd.f32 %v2631_v40, %v978_v8  ;;  %v1059_v11 = vadd.f32 %v2631_v40, %v1058_v9 }
 0x118   : > { %1434 = vst.msk [vmem:[%s2643_s7 + $0xbc] sm:$0xf] %vm1386_vm3, %v1305_v2  ;;  %v1337_v12 = vpack.c.bf16 %v1136_v6, %v1136_v6  ;;  %v1594_v13 = vmax.f32 %v1136_v6, 0.0  ;;  %v1369_v14 = vpack.c.bf16 %v1216_v7, %v1216_v7  ;;  %v1626_v15 = vmax.f32 %v1216_v7, 0.0 }
 0x119   : > { %1818 = vst.msk [vmem:[%s2651_s10 + $0xbc] sm:$0xf] %vm1386_vm3, %v1690_v3  ;;  %v1531_v16 = vmax.f32 %v979_v10, 0.0  ;;  %v1563_v17 = vmax.f32 %v1059_v11, 0.0  ;;  %v1274_v20 = vpack.c.bf16 %v979_v10, %v979_v10  ;;  %v1306_v21 = vpack.c.bf16 %v1059_v11, %v1059_v11 }
 0x11a   : > { %1466 = vst.msk [vmem:[%s2643_s7 + $0x13c] sm:$0xf] %vm1386_vm3, %v1337_v12  ;;  %v1722_v18 = vpack.c.bf16 %v1594_v13, %v1594_v13  ;;  %v1754_v19 = vpack.c.bf16 %v1626_v15, %v1626_v15 }
 0x11b   : > { %1498 = vst.msk [vmem:[%s2643_s7 + $0x1bc] sm:$0xf] %vm1386_vm3, %v1369_v14  ;;  %v1659_v40 = vpack.c.bf16 %v1531_v16, %v1531_v16  ;;  %v1691_v22 = vpack.c.bf16 %v1563_v17, %v1563_v17 }
 0x11c   : > { %1850 = vst.msk [vmem:[%s2651_s10 + $0x13c] sm:$0xf] %vm1386_vm3, %v1722_v18 }
 0x11d   : > { %1882 = vst.msk [vmem:[%s2651_s10 + $0x1bc] sm:$0xf] %vm1386_vm3, %v1754_v19  ;;  %v1138_v23 = vpop.f32.mrf.mxu2  ;;  %v1218_v24 = vpop.f32.mrf.mxu3 }
 0x11e   : > { %1403 = vst.msk [vmem:[%s2643_s7 + $0x40] sm:$0xf] %vm1386_vm3, %v1274_v20  ;;  %v1139_v26 = vadd.f32 %v3036_v25, %v1138_v23  ;;  %v1219_v27 = vadd.f32 %v3036_v25, %v1218_v24  ;;  %v980_v28 = vpop.f32.mrf.mxu0  ;;  %v1060_v29 = vpop.f32.mrf.mxu1 }
 0x11f   : > { %1787 = vst.msk [vmem:[%s2651_s10 + $0x40] sm:$0xf] %vm1386_vm3, %v1659_v40  ;;  %v981_v30 = vadd.f32 %v3036_v25, %v980_v28  ;;  %v1061_v31 = vadd.f32 %v3036_v25, %v1060_v29 }
 0x120   : > { %1435 = vst.msk [vmem:[%s2643_s7 + $0xc0] sm:$0xf] %vm1386_vm3, %v1306_v21  ;;  %v1338_v32 = vpack.c.bf16 %v1139_v26, %v1139_v26  ;;  %v1595_v33 = vmax.f32 %v1139_v26, 0.0  ;;  %v1370_v34 = vpack.c.bf16 %v1219_v27, %v1219_v27  ;;  %v1627_v35 = vmax.f32 %v1219_v27, 0.0 }
 0x121   : > { %1819 = vst.msk [vmem:[%s2651_s10 + $0xc0] sm:$0xf] %vm1386_vm3, %v1691_v22  ;;  %v1532_v36 = vmax.f32 %v981_v30, 0.0  ;;  %v1564_v37 = vmax.f32 %v1061_v31, 0.0  ;;  %v1275_v41 = vpack.c.bf16 %v981_v30, %v981_v30  ;;  %v1307_v43 = vpack.c.bf16 %v1061_v31, %v1061_v31 }
 0x122   : > { %1467 = vst.msk [vmem:[%s2643_s7 + $0x140] sm:$0xf] %vm1386_vm3, %v1338_v32  ;;  %v1723_v38 = vpack.c.bf16 %v1595_v33, %v1595_v33  ;;  %v1755_v39 = vpack.c.bf16 %v1627_v35, %v1627_v35 }
 0x123   : > { %1499 = vst.msk [vmem:[%s2643_s7 + $0x1c0] sm:$0xf] %vm1386_vm3, %v1370_v34  ;;  %v1660_v42 = vpack.c.bf16 %v1532_v36, %v1532_v36  ;;  %v1692_v44 = vpack.c.bf16 %v1564_v37, %v1564_v37 }
 0x124   : > { %1851 = vst.msk [vmem:[%s2651_s10 + $0x140] sm:$0xf] %vm1386_vm3, %v1723_v38 }
 0x125   : > { %1883 = vst.msk [vmem:[%s2651_s10 + $0x1c0] sm:$0xf] %vm1386_vm3, %v1755_v39  ;;  %v1140_v45 = vpop.f32.mrf.mxu2  ;;  %v1220_v46 = vpop.f32.mrf.mxu3 }
 0x126   : > { %1404 = vst.msk [vmem:[%s2643_s7 + $0x44] sm:$0xf] %vm1386_vm3, %v1275_v41  ;;  %v1141_v47 = vadd.f32 %v3036_v25, %v1140_v45  ;;  %v1221_v48 = vadd.f32 %v3036_v25, %v1220_v46  ;;  %v983_v49 = vpop.f32.mrf.mxu0  ;;  %v1063_v50 = vpop.f32.mrf.mxu1 }
 0x127   : > { %1788 = vst.msk [vmem:[%s2651_s10 + $0x44] sm:$0xf] %vm1386_vm3, %v1660_v42  ;;  %v984_v51 = vadd.f32 %v3036_v25, %v983_v49  ;;  %v1064_v52 = vadd.f32 %v3036_v25, %v1063_v50 }
 0x128   : > { %1436 = vst.msk [vmem:[%s2643_s7 + $0xc4] sm:$0xf] %vm1386_vm3, %v1307_v43  ;;  %v1339_v53 = vpack.c.bf16 %v1141_v47, %v1141_v47  ;;  %v1596_v54 = vmax.f32 %v1141_v47, 0.0  ;;  %v1371_v55 = vpack.c.bf16 %v1221_v48, %v1221_v48  ;;  %v1628_v56 = vmax.f32 %v1221_v48, 0.0 }
 0x129   : > { %1820 = vst.msk [vmem:[%s2651_s10 + $0xc4] sm:$0xf] %vm1386_vm3, %v1692_v44  ;;  %v1533_v57 = vmax.f32 %v984_v51, 0.0  ;;  %v1565_v58 = vmax.f32 %v1064_v52, 0.0  ;;  %v1276_v61 = vpack.c.bf16 %v984_v51, %v984_v51  ;;  %v1308_v63 = vpack.c.bf16 %v1064_v52, %v1064_v52 }
 0x12a   : > { %1468 = vst.msk [vmem:[%s2643_s7 + $0x144] sm:$0xf] %vm1386_vm3, %v1339_v53  ;;  %v1724_v59 = vpack.c.bf16 %v1596_v54, %v1596_v54  ;;  %v1756_v60 = vpack.c.bf16 %v1628_v56, %v1628_v56 }
 0x12b   : > { %1500 = vst.msk [vmem:[%s2643_s7 + $0x1c4] sm:$0xf] %vm1386_vm3, %v1371_v55  ;;  %v1661_v62 = vpack.c.bf16 %v1533_v57, %v1533_v57  ;;  %v1693_v0 = vpack.c.bf16 %v1565_v58, %v1565_v58 }
 0x12c   : > { %1852 = vst.msk [vmem:[%s2651_s10 + $0x144] sm:$0xf] %vm1386_vm3, %v1724_v59 }
 0x12d   : > { %1884 = vst.msk [vmem:[%s2651_s10 + $0x1c4] sm:$0xf] %vm1386_vm3, %v1756_v60  ;;  %v1143_v1 = vpop.f32.mrf.mxu2  ;;  %v1223_v2 = vpop.f32.mrf.mxu3 }
 0x12e   : > { %1405 = vst.msk [vmem:[%s2643_s7 + $0x48] sm:$0xf] %vm1386_vm3, %v1276_v61  ;;  %v1144_v3 = vadd.f32 %v3036_v25, %v1143_v1  ;;  %v1224_v4 = vadd.f32 %v3036_v25, %v1223_v2  ;;  %v985_v5 = vpop.f32.mrf.mxu0  ;;  %v1065_v6 = vpop.f32.mrf.mxu1 }
 0x12f   : > { %1789 = vst.msk [vmem:[%s2651_s10 + $0x48] sm:$0xf] %vm1386_vm3, %v1661_v62  ;;  %v986_v7 = vadd.f32 %v3036_v25, %v985_v5  ;;  %v1066_v8 = vadd.f32 %v3036_v25, %v1065_v6 }
 0x130   : > { %1437 = vst.msk [vmem:[%s2643_s7 + $0xc8] sm:$0xf] %vm1386_vm3, %v1308_v63  ;;  %v1340_v9 = vpack.c.bf16 %v1144_v3, %v1144_v3  ;;  %v1597_v10 = vmax.f32 %v1144_v3, 0.0  ;;  %v1372_v11 = vpack.c.bf16 %v1224_v4, %v1224_v4  ;;  %v1629_v12 = vmax.f32 %v1224_v4, 0.0 }
 0x131   : > { %1821 = vst.msk [vmem:[%s2651_s10 + $0xc8] sm:$0xf] %vm1386_vm3, %v1693_v0  ;;  %v1534_v13 = vmax.f32 %v986_v7, 0.0  ;;  %v1566_v14 = vmax.f32 %v1066_v8, 0.0  ;;  %v1277_v17 = vpack.c.bf16 %v986_v7, %v986_v7  ;;  %v1309_v19 = vpack.c.bf16 %v1066_v8, %v1066_v8 }
 0x132   : > { %1469 = vst.msk [vmem:[%s2643_s7 + $0x148] sm:$0xf] %vm1386_vm3, %v1340_v9  ;;  %v1725_v15 = vpack.c.bf16 %v1597_v10, %v1597_v10  ;;  %v1757_v16 = vpack.c.bf16 %v1629_v12, %v1629_v12 }
 0x133   : > { %1501 = vst.msk [vmem:[%s2643_s7 + $0x1c8] sm:$0xf] %vm1386_vm3, %v1372_v11  ;;  %v1662_v18 = vpack.c.bf16 %v1534_v13, %v1534_v13  ;;  %v1694_v20 = vpack.c.bf16 %v1566_v14, %v1566_v14 }
 0x134   : > { %1853 = vst.msk [vmem:[%s2651_s10 + $0x148] sm:$0xf] %vm1386_vm3, %v1725_v15 }
 0x135   : > { %1885 = vst.msk [vmem:[%s2651_s10 + $0x1c8] sm:$0xf] %vm1386_vm3, %v1757_v16  ;;  %v1145_v40 = vpop.f32.mrf.mxu2  ;;  %v1225_v21 = vpop.f32.mrf.mxu3 }
 0x136   : > { %1406 = vst.msk [vmem:[%s2643_s7 + $0x4c] sm:$0xf] %vm1386_vm3, %v1277_v17  ;;  %v1146_v22 = vadd.f32 %v3036_v25, %v1145_v40  ;;  %v1226_v23 = vadd.f32 %v3036_v25, %v1225_v21  ;;  %v988_v24 = vpop.f32.mrf.mxu0  ;;  %v1068_v26 = vpop.f32.mrf.mxu1 }
 0x137   : > { %1790 = vst.msk [vmem:[%s2651_s10 + $0x4c] sm:$0xf] %vm1386_vm3, %v1662_v18  ;;  %v989_v27 = vadd.f32 %v3036_v25, %v988_v24  ;;  %v1069_v28 = vadd.f32 %v3036_v25, %v1068_v26 }
 0x138   : > { %1438 = vst.msk [vmem:[%s2643_s7 + $0xcc] sm:$0xf] %vm1386_vm3, %v1309_v19  ;;  %v1341_v29 = vpack.c.bf16 %v1146_v22, %v1146_v22  ;;  %v1598_v30 = vmax.f32 %v1146_v22, 0.0  ;;  %v1373_v31 = vpack.c.bf16 %v1226_v23, %v1226_v23  ;;  %v1630_v32 = vmax.f32 %v1226_v23, 0.0 }
 0x139   : > { %1822 = vst.msk [vmem:[%s2651_s10 + $0xcc] sm:$0xf] %vm1386_vm3, %v1694_v20  ;;  %v1535_v33 = vmax.f32 %v989_v27, 0.0  ;;  %v1567_v34 = vmax.f32 %v1069_v28, 0.0  ;;  %v1278_v37 = vpack.c.bf16 %v989_v27, %v989_v27  ;;  %v1310_v39 = vpack.c.bf16 %v1069_v28, %v1069_v28 }
 0x13a   : > { %1470 = vst.msk [vmem:[%s2643_s7 + $0x14c] sm:$0xf] %vm1386_vm3, %v1341_v29  ;;  %v1726_v35 = vpack.c.bf16 %v1598_v30, %v1598_v30  ;;  %v1758_v36 = vpack.c.bf16 %v1630_v32, %v1630_v32 }
 0x13b   : > { %1502 = vst.msk [vmem:[%s2643_s7 + $0x1cc] sm:$0xf] %vm1386_vm3, %v1373_v31  ;;  %v1663_v38 = vpack.c.bf16 %v1535_v33, %v1535_v33  ;;  %v1695_v41 = vpack.c.bf16 %v1567_v34, %v1567_v34 }
 0x13c   : > { %1854 = vst.msk [vmem:[%s2651_s10 + $0x14c] sm:$0xf] %vm1386_vm3, %v1726_v35 }
 0x13d   : > { %1886 = vst.msk [vmem:[%s2651_s10 + $0x1cc] sm:$0xf] %vm1386_vm3, %v1758_v36  ;;  %v1148_v42 = vpop.f32.mrf.mxu2  ;;  %v1228_v43 = vpop.f32.mrf.mxu3 }
 0x13e   : > { %1407 = vst.msk [vmem:[%s2643_s7 + $0x50] sm:$0xf] %vm1386_vm3, %v1278_v37  ;;  %v1149_v44 = vadd.f32 %v3036_v25, %v1148_v42  ;;  %v1229_v45 = vadd.f32 %v3036_v25, %v1228_v43  ;;  %v990_v46 = vpop.f32.mrf.mxu0  ;;  %v1070_v47 = vpop.f32.mrf.mxu1 }
 0x13f   : > { %1791 = vst.msk [vmem:[%s2651_s10 + $0x50] sm:$0xf] %vm1386_vm3, %v1663_v38  ;;  %v991_v48 = vadd.f32 %v3036_v25, %v990_v46  ;;  %v1071_v49 = vadd.f32 %v3036_v25, %v1070_v47 }
 0x140   : > { %1439 = vst.msk [vmem:[%s2643_s7 + $0xd0] sm:$0xf] %vm1386_vm3, %v1310_v39  ;;  %v1342_v50 = vpack.c.bf16 %v1149_v44, %v1149_v44  ;;  %v1599_v51 = vmax.f32 %v1149_v44, 0.0  ;;  %v1374_v52 = vpack.c.bf16 %v1229_v45, %v1229_v45  ;;  %v1631_v53 = vmax.f32 %v1229_v45, 0.0 }
 0x141   : > { %1823 = vst.msk [vmem:[%s2651_s10 + $0xd0] sm:$0xf] %vm1386_vm3, %v1695_v41  ;;  %v1536_v54 = vmax.f32 %v991_v48, 0.0  ;;  %v1568_v55 = vmax.f32 %v1071_v49, 0.0  ;;  %v1279_v58 = vpack.c.bf16 %v991_v48, %v991_v48  ;;  %v1311_v60 = vpack.c.bf16 %v1071_v49, %v1071_v49 }
 0x142   : > { %1471 = vst.msk [vmem:[%s2643_s7 + $0x150] sm:$0xf] %vm1386_vm3, %v1342_v50  ;;  %v1727_v56 = vpack.c.bf16 %v1599_v51, %v1599_v51  ;;  %v1759_v57 = vpack.c.bf16 %v1631_v53, %v1631_v53 }
 0x143   : > { %1503 = vst.msk [vmem:[%s2643_s7 + $0x1d0] sm:$0xf] %vm1386_vm3, %v1374_v52  ;;  %v1664_v59 = vpack.c.bf16 %v1536_v54, %v1536_v54  ;;  %v1696_v61 = vpack.c.bf16 %v1568_v55, %v1568_v55 }
 0x144   : > { %1855 = vst.msk [vmem:[%s2651_s10 + $0x150] sm:$0xf] %vm1386_vm3, %v1727_v56 }
 0x145   : > { %1887 = vst.msk [vmem:[%s2651_s10 + $0x1d0] sm:$0xf] %vm1386_vm3, %v1759_v57  ;;  %v1150_v62 = vpop.f32.mrf.mxu2  ;;  %v1230_v63 = vpop.f32.mrf.mxu3 }
 0x146   : > { %1408 = vst.msk [vmem:[%s2643_s7 + $0x54] sm:$0xf] %vm1386_vm3, %v1279_v58  ;;  %v1151_v0 = vadd.f32 %v3036_v25, %v1150_v62  ;;  %v1231_v1 = vadd.f32 %v3036_v25, %v1230_v63  ;;  %v993_v2 = vpop.f32.mrf.mxu0  ;;  %v1073_v3 = vpop.f32.mrf.mxu1 }
 0x147   : > { %1792 = vst.msk [vmem:[%s2651_s10 + $0x54] sm:$0xf] %vm1386_vm3, %v1664_v59  ;;  %v994_v4 = vadd.f32 %v3036_v25, %v993_v2  ;;  %v1074_v5 = vadd.f32 %v3036_v25, %v1073_v3 }
 0x148   : > { %1440 = vst.msk [vmem:[%s2643_s7 + $0xd4] sm:$0xf] %vm1386_vm3, %v1311_v60  ;;  %v1343_v6 = vpack.c.bf16 %v1151_v0, %v1151_v0  ;;  %v1600_v7 = vmax.f32 %v1151_v0, 0.0  ;;  %v1375_v8 = vpack.c.bf16 %v1231_v1, %v1231_v1  ;;  %v1632_v9 = vmax.f32 %v1231_v1, 0.0 }
 0x149   : > { %1824 = vst.msk [vmem:[%s2651_s10 + $0xd4] sm:$0xf] %vm1386_vm3, %v1696_v61  ;;  %v1537_v10 = vmax.f32 %v994_v4, 0.0  ;;  %v1569_v11 = vmax.f32 %v1074_v5, 0.0  ;;  %v1280_v14 = vpack.c.bf16 %v994_v4, %v994_v4  ;;  %v1312_v16 = vpack.c.bf16 %v1074_v5, %v1074_v5 }
 0x14a   : > { %1472 = vst.msk [vmem:[%s2643_s7 + $0x154] sm:$0xf] %vm1386_vm3, %v1343_v6  ;;  %v1728_v12 = vpack.c.bf16 %v1600_v7, %v1600_v7  ;;  %v1760_v13 = vpack.c.bf16 %v1632_v9, %v1632_v9 }
 0x14b   : > { %1504 = vst.msk [vmem:[%s2643_s7 + $0x1d4] sm:$0xf] %vm1386_vm3, %v1375_v8  ;;  %v1665_v15 = vpack.c.bf16 %v1537_v10, %v1537_v10  ;;  %v1697_v17 = vpack.c.bf16 %v1569_v11, %v1569_v11 }
 0x14c   : > { %1856 = vst.msk [vmem:[%s2651_s10 + $0x154] sm:$0xf] %vm1386_vm3, %v1728_v12 }
 0x14d   : > { %1888 = vst.msk [vmem:[%s2651_s10 + $0x1d4] sm:$0xf] %vm1386_vm3, %v1760_v13  ;;  %v1153_v18 = vpop.f32.mrf.mxu2  ;;  %v1233_v19 = vpop.f32.mrf.mxu3 }
 0x14e   : > { %1409 = vst.msk [vmem:[%s2643_s7 + $0x58] sm:$0xf] %vm1386_vm3, %v1280_v14  ;;  %v1154_v20 = vadd.f32 %v3036_v25, %v1153_v18  ;;  %v1234_v40 = vadd.f32 %v3036_v25, %v1233_v19  ;;  %v995_v21 = vpop.f32.mrf.mxu0  ;;  %v1075_v22 = vpop.f32.mrf.mxu1 }
 0x14f   : > { %1793 = vst.msk [vmem:[%s2651_s10 + $0x58] sm:$0xf] %vm1386_vm3, %v1665_v15  ;;  %v996_v23 = vadd.f32 %v3036_v25, %v995_v21  ;;  %v1076_v24 = vadd.f32 %v3036_v25, %v1075_v22 }
 0x150   : > { %1441 = vst.msk [vmem:[%s2643_s7 + $0xd8] sm:$0xf] %vm1386_vm3, %v1312_v16  ;;  %v1344_v26 = vpack.c.bf16 %v1154_v20, %v1154_v20  ;;  %v1601_v27 = vmax.f32 %v1154_v20, 0.0  ;;  %v1376_v28 = vpack.c.bf16 %v1234_v40, %v1234_v40  ;;  %v1633_v29 = vmax.f32 %v1234_v40, 0.0 }
 0x151   : > { %1825 = vst.msk [vmem:[%s2651_s10 + $0xd8] sm:$0xf] %vm1386_vm3, %v1697_v17  ;;  %v1538_v30 = vmax.f32 %v996_v23, 0.0  ;;  %v1570_v31 = vmax.f32 %v1076_v24, 0.0  ;;  %v1281_v34 = vpack.c.bf16 %v996_v23, %v996_v23  ;;  %v1313_v36 = vpack.c.bf16 %v1076_v24, %v1076_v24 }
 0x152   : > { %1473 = vst.msk [vmem:[%s2643_s7 + $0x158] sm:$0xf] %vm1386_vm3, %v1344_v26  ;;  %v1729_v32 = vpack.c.bf16 %v1601_v27, %v1601_v27  ;;  %v1761_v33 = vpack.c.bf16 %v1633_v29, %v1633_v29 }
 0x153   : > { %1505 = vst.msk [vmem:[%s2643_s7 + $0x1d8] sm:$0xf] %vm1386_vm3, %v1376_v28  ;;  %v1666_v35 = vpack.c.bf16 %v1538_v30, %v1538_v30  ;;  %v1698_v37 = vpack.c.bf16 %v1570_v31, %v1570_v31 }
 0x154   : > { %1857 = vst.msk [vmem:[%s2651_s10 + $0x158] sm:$0xf] %vm1386_vm3, %v1729_v32 }
 0x155   : > { %1889 = vst.msk [vmem:[%s2651_s10 + $0x1d8] sm:$0xf] %vm1386_vm3, %v1761_v33  ;;  %v1155_v38 = vpop.f32.mrf.mxu2  ;;  %v1235_v39 = vpop.f32.mrf.mxu3 }
 0x156   : > { %1410 = vst.msk [vmem:[%s2643_s7 + $0x5c] sm:$0xf] %vm1386_vm3, %v1281_v34  ;;  %v1156_v41 = vadd.f32 %v3036_v25, %v1155_v38  ;;  %v1236_v42 = vadd.f32 %v3036_v25, %v1235_v39  ;;  %v998_v43 = vpop.f32.mrf.mxu0  ;;  %v1078_v44 = vpop.f32.mrf.mxu1 }
 0x157   : > { %1794 = vst.msk [vmem:[%s2651_s10 + $0x5c] sm:$0xf] %vm1386_vm3, %v1666_v35  ;;  %v999_v45 = vadd.f32 %v3036_v25, %v998_v43  ;;  %v1079_v46 = vadd.f32 %v3036_v25, %v1078_v44 }
 0x158   : > { %1442 = vst.msk [vmem:[%s2643_s7 + $0xdc] sm:$0xf] %vm1386_vm3, %v1313_v36  ;;  %v1345_v47 = vpack.c.bf16 %v1156_v41, %v1156_v41  ;;  %v1602_v48 = vmax.f32 %v1156_v41, 0.0  ;;  %v1377_v49 = vpack.c.bf16 %v1236_v42, %v1236_v42  ;;  %v1634_v50 = vmax.f32 %v1236_v42, 0.0 }
 0x159   : > { %1826 = vst.msk [vmem:[%s2651_s10 + $0xdc] sm:$0xf] %vm1386_vm3, %v1698_v37  ;;  %v1539_v51 = vmax.f32 %v999_v45, 0.0  ;;  %v1571_v52 = vmax.f32 %v1079_v46, 0.0  ;;  %v1282_v55 = vpack.c.bf16 %v999_v45, %v999_v45  ;;  %v1314_v57 = vpack.c.bf16 %v1079_v46, %v1079_v46 }
 0x15a   : > { %1474 = vst.msk [vmem:[%s2643_s7 + $0x15c] sm:$0xf] %vm1386_vm3, %v1345_v47  ;;  %v1730_v53 = vpack.c.bf16 %v1602_v48, %v1602_v48  ;;  %v1762_v54 = vpack.c.bf16 %v1634_v50, %v1634_v50 }
 0x15b   : > { %1506 = vst.msk [vmem:[%s2643_s7 + $0x1dc] sm:$0xf] %vm1386_vm3, %v1377_v49  ;;  %v1667_v56 = vpack.c.bf16 %v1539_v51, %v1539_v51  ;;  %v1699_v58 = vpack.c.bf16 %v1571_v52, %v1571_v52 }
 0x15c   : > { %1858 = vst.msk [vmem:[%s2651_s10 + $0x15c] sm:$0xf] %vm1386_vm3, %v1730_v53 }
 0x15d   : > { %1890 = vst.msk [vmem:[%s2651_s10 + $0x1dc] sm:$0xf] %vm1386_vm3, %v1762_v54  ;;  %v1158_v59 = vpop.f32.mrf.mxu2  ;;  %v1238_v60 = vpop.f32.mrf.mxu3 }
 0x15e   : > { %1411 = vst.msk [vmem:[%s2643_s7 + $0x60] sm:$0xf] %vm1386_vm3, %v1282_v55  ;;  %v1159_v61 = vadd.f32 %v3036_v25, %v1158_v59  ;;  %v1239_v62 = vadd.f32 %v3036_v25, %v1238_v60  ;;  %v1000_v63 = vpop.f32.mrf.mxu0  ;;  %v1080_v0 = vpop.f32.mrf.mxu1 }
 0x15f   : > { %1795 = vst.msk [vmem:[%s2651_s10 + $0x60] sm:$0xf] %vm1386_vm3, %v1667_v56  ;;  %v1001_v1 = vadd.f32 %v3036_v25, %v1000_v63  ;;  %v1081_v2 = vadd.f32 %v3036_v25, %v1080_v0 }
 0x160   : > { %1443 = vst.msk [vmem:[%s2643_s7 + $0xe0] sm:$0xf] %vm1386_vm3, %v1314_v57  ;;  %v1346_v3 = vpack.c.bf16 %v1159_v61, %v1159_v61  ;;  %v1603_v4 = vmax.f32 %v1159_v61, 0.0  ;;  %v1378_v5 = vpack.c.bf16 %v1239_v62, %v1239_v62  ;;  %v1635_v6 = vmax.f32 %v1239_v62, 0.0 }
 0x161   : > { %1827 = vst.msk [vmem:[%s2651_s10 + $0xe0] sm:$0xf] %vm1386_vm3, %v1699_v58  ;;  %v1540_v7 = vmax.f32 %v1001_v1, 0.0  ;;  %v1572_v8 = vmax.f32 %v1081_v2, 0.0  ;;  %v1283_v11 = vpack.c.bf16 %v1001_v1, %v1001_v1  ;;  %v1315_v13 = vpack.c.bf16 %v1081_v2, %v1081_v2 }
 0x162   : > { %1475 = vst.msk [vmem:[%s2643_s7 + $0x160] sm:$0xf] %vm1386_vm3, %v1346_v3  ;;  %v1731_v9 = vpack.c.bf16 %v1603_v4, %v1603_v4  ;;  %v1763_v10 = vpack.c.bf16 %v1635_v6, %v1635_v6 }
 0x163   : > { %1507 = vst.msk [vmem:[%s2643_s7 + $0x1e0] sm:$0xf] %vm1386_vm3, %v1378_v5  ;;  %v1668_v12 = vpack.c.bf16 %v1540_v7, %v1540_v7  ;;  %v1700_v14 = vpack.c.bf16 %v1572_v8, %v1572_v8 }
 0x164   : > { %1859 = vst.msk [vmem:[%s2651_s10 + $0x160] sm:$0xf] %vm1386_vm3, %v1731_v9 }
 0x165   : > { %1891 = vst.msk [vmem:[%s2651_s10 + $0x1e0] sm:$0xf] %vm1386_vm3, %v1763_v10  ;;  %v1160_v15 = vpop.f32.mrf.mxu2  ;;  %v1240_v16 = vpop.f32.mrf.mxu3 }
 0x166   : > { %1412 = vst.msk [vmem:[%s2643_s7 + $0x64] sm:$0xf] %vm1386_vm3, %v1283_v11  ;;  %v1161_v17 = vadd.f32 %v3036_v25, %v1160_v15  ;;  %v1241_v18 = vadd.f32 %v3036_v25, %v1240_v16  ;;  %v1003_v19 = vpop.f32.mrf.mxu0  ;;  %v1083_v20 = vpop.f32.mrf.mxu1 }
 0x167   : > { %1796 = vst.msk [vmem:[%s2651_s10 + $0x64] sm:$0xf] %vm1386_vm3, %v1668_v12  ;;  %v1004_v40 = vadd.f32 %v3036_v25, %v1003_v19  ;;  %v1084_v21 = vadd.f32 %v3036_v25, %v1083_v20 }
 0x168   : > { %1444 = vst.msk [vmem:[%s2643_s7 + $0xe4] sm:$0xf] %vm1386_vm3, %v1315_v13  ;;  %v1347_v22 = vpack.c.bf16 %v1161_v17, %v1161_v17  ;;  %v1604_v23 = vmax.f32 %v1161_v17, 0.0  ;;  %v1379_v24 = vpack.c.bf16 %v1241_v18, %v1241_v18  ;;  %v1636_v26 = vmax.f32 %v1241_v18, 0.0 }
 0x169   : > { %1828 = vst.msk [vmem:[%s2651_s10 + $0xe4] sm:$0xf] %vm1386_vm3, %v1700_v14  ;;  %v1541_v27 = vmax.f32 %v1004_v40, 0.0  ;;  %v1573_v28 = vmax.f32 %v1084_v21, 0.0  ;;  %v1284_v31 = vpack.c.bf16 %v1004_v40, %v1004_v40  ;;  %v1316_v33 = vpack.c.bf16 %v1084_v21, %v1084_v21 }
 0x16a   : > { %1476 = vst.msk [vmem:[%s2643_s7 + $0x164] sm:$0xf] %vm1386_vm3, %v1347_v22  ;;  %v1732_v29 = vpack.c.bf16 %v1604_v23, %v1604_v23  ;;  %v1764_v30 = vpack.c.bf16 %v1636_v26, %v1636_v26 }
 0x16b   : > { %1508 = vst.msk [vmem:[%s2643_s7 + $0x1e4] sm:$0xf] %vm1386_vm3, %v1379_v24  ;;  %v1669_v32 = vpack.c.bf16 %v1541_v27, %v1541_v27  ;;  %v1701_v34 = vpack.c.bf16 %v1573_v28, %v1573_v28 }
 0x16c   : > { %1860 = vst.msk [vmem:[%s2651_s10 + $0x164] sm:$0xf] %vm1386_vm3, %v1732_v29 }
 0x16d   : > { %1892 = vst.msk [vmem:[%s2651_s10 + $0x1e4] sm:$0xf] %vm1386_vm3, %v1764_v30  ;;  %v1163_v35 = vpop.f32.mrf.mxu2  ;;  %v1243_v36 = vpop.f32.mrf.mxu3 }
 0x16e   : > { %1413 = vst.msk [vmem:[%s2643_s7 + $0x68] sm:$0xf] %vm1386_vm3, %v1284_v31  ;;  %v1164_v37 = vadd.f32 %v3036_v25, %v1163_v35  ;;  %v1244_v38 = vadd.f32 %v3036_v25, %v1243_v36  ;;  %v1005_v39 = vpop.f32.mrf.mxu0  ;;  %v1085_v41 = vpop.f32.mrf.mxu1 }
 0x16f   : > { %1797 = vst.msk [vmem:[%s2651_s10 + $0x68] sm:$0xf] %vm1386_vm3, %v1669_v32  ;;  %v1006_v42 = vadd.f32 %v3036_v25, %v1005_v39  ;;  %v1086_v43 = vadd.f32 %v3036_v25, %v1085_v41 }
 0x170   : > { %1445 = vst.msk [vmem:[%s2643_s7 + $0xe8] sm:$0xf] %vm1386_vm3, %v1316_v33  ;;  %v1348_v44 = vpack.c.bf16 %v1164_v37, %v1164_v37  ;;  %v1605_v45 = vmax.f32 %v1164_v37, 0.0  ;;  %v1380_v46 = vpack.c.bf16 %v1244_v38, %v1244_v38  ;;  %v1637_v47 = vmax.f32 %v1244_v38, 0.0 }
 0x171   : > { %1829 = vst.msk [vmem:[%s2651_s10 + $0xe8] sm:$0xf] %vm1386_vm3, %v1701_v34  ;;  %v1542_v48 = vmax.f32 %v1006_v42, 0.0  ;;  %v1574_v49 = vmax.f32 %v1086_v43, 0.0  ;;  %v1285_v52 = vpack.c.bf16 %v1006_v42, %v1006_v42  ;;  %v1317_v54 = vpack.c.bf16 %v1086_v43, %v1086_v43 }
 0x172   : > { %1477 = vst.msk [vmem:[%s2643_s7 + $0x168] sm:$0xf] %vm1386_vm3, %v1348_v44  ;;  %v1733_v50 = vpack.c.bf16 %v1605_v45, %v1605_v45  ;;  %v1765_v51 = vpack.c.bf16 %v1637_v47, %v1637_v47 }
 0x173   : > { %1509 = vst.msk [vmem:[%s2643_s7 + $0x1e8] sm:$0xf] %vm1386_vm3, %v1380_v46  ;;  %v1670_v53 = vpack.c.bf16 %v1542_v48, %v1542_v48  ;;  %v1702_v55 = vpack.c.bf16 %v1574_v49, %v1574_v49 }
 0x174   : > { %1861 = vst.msk [vmem:[%s2651_s10 + $0x168] sm:$0xf] %vm1386_vm3, %v1733_v50 }
 0x175   : > { %1893 = vst.msk [vmem:[%s2651_s10 + $0x1e8] sm:$0xf] %vm1386_vm3, %v1765_v51  ;;  %v1165_v56 = vpop.f32.mrf.mxu2  ;;  %v1245_v57 = vpop.f32.mrf.mxu3 }
 0x176   : > { %1414 = vst.msk [vmem:[%s2643_s7 + $0x6c] sm:$0xf] %vm1386_vm3, %v1285_v52  ;;  %v1166_v58 = vadd.f32 %v3036_v25, %v1165_v56  ;;  %v1246_v59 = vadd.f32 %v3036_v25, %v1245_v57  ;;  %v1008_v60 = vpop.f32.mrf.mxu0  ;;  %v1088_v61 = vpop.f32.mrf.mxu1 }
 0x177   : > { %1798 = vst.msk [vmem:[%s2651_s10 + $0x6c] sm:$0xf] %vm1386_vm3, %v1670_v53  ;;  %v1009_v62 = vadd.f32 %v3036_v25, %v1008_v60  ;;  %v1089_v63 = vadd.f32 %v3036_v25, %v1088_v61 }
 0x178   : > { %1446 = vst.msk [vmem:[%s2643_s7 + $0xec] sm:$0xf] %vm1386_vm3, %v1317_v54  ;;  %v1349_v0 = vpack.c.bf16 %v1166_v58, %v1166_v58  ;;  %v1606_v1 = vmax.f32 %v1166_v58, 0.0  ;;  %v1381_v2 = vpack.c.bf16 %v1246_v59, %v1246_v59  ;;  %v1638_v3 = vmax.f32 %v1246_v59, 0.0 }
 0x179   : > { %1830 = vst.msk [vmem:[%s2651_s10 + $0xec] sm:$0xf] %vm1386_vm3, %v1702_v55  ;;  %v1543_v4 = vmax.f32 %v1009_v62, 0.0  ;;  %v1575_v5 = vmax.f32 %v1089_v63, 0.0  ;;  %v1286_v8 = vpack.c.bf16 %v1009_v62, %v1009_v62  ;;  %v1318_v10 = vpack.c.bf16 %v1089_v63, %v1089_v63 }
 0x17a   : > { %1478 = vst.msk [vmem:[%s2643_s7 + $0x16c] sm:$0xf] %vm1386_vm3, %v1349_v0  ;;  %v1734_v6 = vpack.c.bf16 %v1606_v1, %v1606_v1  ;;  %v1766_v7 = vpack.c.bf16 %v1638_v3, %v1638_v3 }
 0x17b   : > { %1510 = vst.msk [vmem:[%s2643_s7 + $0x1ec] sm:$0xf] %vm1386_vm3, %v1381_v2  ;;  %v1671_v9 = vpack.c.bf16 %v1543_v4, %v1543_v4  ;;  %v1703_v11 = vpack.c.bf16 %v1575_v5, %v1575_v5 }
 0x17c   : > { %1862 = vst.msk [vmem:[%s2651_s10 + $0x16c] sm:$0xf] %vm1386_vm3, %v1734_v6 }
 0x17d   : > { %1894 = vst.msk [vmem:[%s2651_s10 + $0x1ec] sm:$0xf] %vm1386_vm3, %v1766_v7  ;;  %v1168_v12 = vpop.f32.mrf.mxu2  ;;  %v1248_v13 = vpop.f32.mrf.mxu3 }
 0x17e   : > { %1415 = vst.msk [vmem:[%s2643_s7 + $0x70] sm:$0xf] %vm1386_vm3, %v1286_v8  ;;  %v1169_v14 = vadd.f32 %v3036_v25, %v1168_v12  ;;  %v1249_v15 = vadd.f32 %v3036_v25, %v1248_v13  ;;  %v1010_v16 = vpop.f32.mrf.mxu0  ;;  %v1090_v17 = vpop.f32.mrf.mxu1 }
 0x17f   : > { %1799 = vst.msk [vmem:[%s2651_s10 + $0x70] sm:$0xf] %vm1386_vm3, %v1671_v9  ;;  %v1011_v18 = vadd.f32 %v3036_v25, %v1010_v16  ;;  %v1091_v19 = vadd.f32 %v3036_v25, %v1090_v17 }
 0x180   : > { %1447 = vst.msk [vmem:[%s2643_s7 + $0xf0] sm:$0xf] %vm1386_vm3, %v1318_v10  ;;  %v1350_v20 = vpack.c.bf16 %v1169_v14, %v1169_v14  ;;  %v1607_v40 = vmax.f32 %v1169_v14, 0.0  ;;  %v1382_v21 = vpack.c.bf16 %v1249_v15, %v1249_v15  ;;  %v1639_v22 = vmax.f32 %v1249_v15, 0.0 }
 0x181   : > { %1831 = vst.msk [vmem:[%s2651_s10 + $0xf0] sm:$0xf] %vm1386_vm3, %v1703_v11  ;;  %v1544_v23 = vmax.f32 %v1011_v18, 0.0  ;;  %v1576_v24 = vmax.f32 %v1091_v19, 0.0  ;;  %v1287_v28 = vpack.c.bf16 %v1011_v18, %v1011_v18  ;;  %v1319_v30 = vpack.c.bf16 %v1091_v19, %v1091_v19 }
 0x182   : > { %1479 = vst.msk [vmem:[%s2643_s7 + $0x170] sm:$0xf] %vm1386_vm3, %v1350_v20  ;;  %v1735_v26 = vpack.c.bf16 %v1607_v40, %v1607_v40  ;;  %v1767_v27 = vpack.c.bf16 %v1639_v22, %v1639_v22 }
 0x183   : > { %1511 = vst.msk [vmem:[%s2643_s7 + $0x1f0] sm:$0xf] %vm1386_vm3, %v1382_v21  ;;  %v1672_v29 = vpack.c.bf16 %v1544_v23, %v1544_v23  ;;  %v1704_v31 = vpack.c.bf16 %v1576_v24, %v1576_v24 }
 0x184   : > { %1863 = vst.msk [vmem:[%s2651_s10 + $0x170] sm:$0xf] %vm1386_vm3, %v1735_v26 }
 0x185   : > { %1895 = vst.msk [vmem:[%s2651_s10 + $0x1f0] sm:$0xf] %vm1386_vm3, %v1767_v27  ;;  %v1170_v32 = vpop.f32.mrf.mxu2  ;;  %v1250_v33 = vpop.f32.mrf.mxu3 }
 0x186   : > { %1416 = vst.msk [vmem:[%s2643_s7 + $0x74] sm:$0xf] %vm1386_vm3, %v1287_v28  ;;  %v1171_v34 = vadd.f32 %v3036_v25, %v1170_v32  ;;  %v1251_v35 = vadd.f32 %v3036_v25, %v1250_v33  ;;  %v1013_v36 = vpop.f32.mrf.mxu0  ;;  %v1093_v37 = vpop.f32.mrf.mxu1 }
 0x187   : > { %1800 = vst.msk [vmem:[%s2651_s10 + $0x74] sm:$0xf] %vm1386_vm3, %v1672_v29  ;;  %v1014_v38 = vadd.f32 %v3036_v25, %v1013_v36  ;;  %v1094_v39 = vadd.f32 %v3036_v25, %v1093_v37 }
 0x188   : > { %1448 = vst.msk [vmem:[%s2643_s7 + $0xf4] sm:$0xf] %vm1386_vm3, %v1319_v30  ;;  %v1351_v41 = vpack.c.bf16 %v1171_v34, %v1171_v34  ;;  %v1608_v42 = vmax.f32 %v1171_v34, 0.0  ;;  %v1383_v43 = vpack.c.bf16 %v1251_v35, %v1251_v35  ;;  %v1640_v44 = vmax.f32 %v1251_v35, 0.0 }
 0x189   : > { %1832 = vst.msk [vmem:[%s2651_s10 + $0xf4] sm:$0xf] %vm1386_vm3, %v1704_v31  ;;  %v1545_v45 = vmax.f32 %v1014_v38, 0.0  ;;  %v1577_v46 = vmax.f32 %v1094_v39, 0.0  ;;  %v1288_v49 = vpack.c.bf16 %v1014_v38, %v1014_v38  ;;  %v1320_v51 = vpack.c.bf16 %v1094_v39, %v1094_v39 }
 0x18a   : > { %1480 = vst.msk [vmem:[%s2643_s7 + $0x174] sm:$0xf] %vm1386_vm3, %v1351_v41  ;;  %v1736_v47 = vpack.c.bf16 %v1608_v42, %v1608_v42  ;;  %v1768_v48 = vpack.c.bf16 %v1640_v44, %v1640_v44 }
 0x18b   : > { %1512 = vst.msk [vmem:[%s2643_s7 + $0x1f4] sm:$0xf] %vm1386_vm3, %v1383_v43  ;;  %v1673_v50 = vpack.c.bf16 %v1545_v45, %v1545_v45  ;;  %v1705_v52 = vpack.c.bf16 %v1577_v46, %v1577_v46 }
 0x18c   : > { %1864 = vst.msk [vmem:[%s2651_s10 + $0x174] sm:$0xf] %vm1386_vm3, %v1736_v47 }
 0x18d   : > { %1896 = vst.msk [vmem:[%s2651_s10 + $0x1f4] sm:$0xf] %vm1386_vm3, %v1768_v48  ;;  %v1173_v53 = vpop.f32.mrf.mxu2  ;;  %v1253_v54 = vpop.f32.mrf.mxu3 }
 0x18e   : > { %1417 = vst.msk [vmem:[%s2643_s7 + $0x78] sm:$0xf] %vm1386_vm3, %v1288_v49  ;;  %v1174_v55 = vadd.f32 %v3036_v25, %v1173_v53  ;;  %v1254_v56 = vadd.f32 %v3036_v25, %v1253_v54  ;;  %v1015_v57 = vpop.f32.mrf.mxu0  ;;  %v1095_v58 = vpop.f32.mrf.mxu1 }
 0x18f   : > { %1801 = vst.msk [vmem:[%s2651_s10 + $0x78] sm:$0xf] %vm1386_vm3, %v1673_v50  ;;  %v1016_v59 = vadd.f32 %v3036_v25, %v1015_v57  ;;  %v1096_v60 = vadd.f32 %v3036_v25, %v1095_v58 }
 0x190   : > { %1449 = vst.msk [vmem:[%s2643_s7 + $0xf8] sm:$0xf] %vm1386_vm3, %v1320_v51  ;;  %v1352_v61 = vpack.c.bf16 %v1174_v55, %v1174_v55  ;;  %v1609_v62 = vmax.f32 %v1174_v55, 0.0  ;;  %v1384_v63 = vpack.c.bf16 %v1254_v56, %v1254_v56  ;;  %v1641_v0 = vmax.f32 %v1254_v56, 0.0 }
 0x191   : > { %1833 = vst.msk [vmem:[%s2651_s10 + $0xf8] sm:$0xf] %vm1386_vm3, %v1705_v52  ;;  %v1546_v1 = vmax.f32 %v1016_v59, 0.0  ;;  %v1578_v2 = vmax.f32 %v1096_v60, 0.0  ;;  %v1289_v5 = vpack.c.bf16 %v1016_v59, %v1016_v59  ;;  %v1321_v7 = vpack.c.bf16 %v1096_v60, %v1096_v60 }
 0x192   : > { %1481 = vst.msk [vmem:[%s2643_s7 + $0x178] sm:$0xf] %vm1386_vm3, %v1352_v61  ;;  %v1737_v3 = vpack.c.bf16 %v1609_v62, %v1609_v62  ;;  %v1769_v4 = vpack.c.bf16 %v1641_v0, %v1641_v0 }
 0x193   : > { %1513 = vst.msk [vmem:[%s2643_s7 + $0x1f8] sm:$0xf] %vm1386_vm3, %v1384_v63  ;;  %v1674_v6 = vpack.c.bf16 %v1546_v1, %v1546_v1  ;;  %v1706_v8 = vpack.c.bf16 %v1578_v2, %v1578_v2 }
 0x194   : > { %1865 = vst.msk [vmem:[%s2651_s10 + $0x178] sm:$0xf] %vm1386_vm3, %v1737_v3 }
 0x195   : > { %1897 = vst.msk [vmem:[%s2651_s10 + $0x1f8] sm:$0xf] %vm1386_vm3, %v1769_v4  ;;  %v1175_v9 = vpop.f32.mrf.mxu2  ;;  %v1255_v10 = vpop.f32.mrf.mxu3 }
 0x196   : > { %1418 = vst.msk [vmem:[%s2643_s7 + $0x7c] sm:$0xf] %vm1386_vm3, %v1289_v5  ;;  %v1176_v11 = vadd.f32 %v3036_v25, %v1175_v9  ;;  %v1256_v12 = vadd.f32 %v3036_v25, %v1255_v10 }
 0x197   : > { %1802 = vst.msk [vmem:[%s2651_s10 + $0x7c] sm:$0xf] %vm1386_vm3, %v1674_v6 }
 0x198   : > { %1450 = vst.msk [vmem:[%s2643_s7 + $0xfc] sm:$0xf] %vm1386_vm3, %v1321_v7  ;;  %v1353_v13 = vpack.c.bf16 %v1176_v11, %v1176_v11  ;;  %v1610_v14 = vmax.f32 %v1176_v11, 0.0  ;;  %v1385_v15 = vpack.c.bf16 %v1256_v12, %v1256_v12  ;;  %v1642_v16 = vmax.f32 %v1256_v12, 0.0 }
 0x199   : > { %1834 = vst.msk [vmem:[%s2651_s10 + $0xfc] sm:$0xf] %vm1386_vm3, %v1706_v8 }
 0x19a   : > { %1482 = vst.msk [vmem:[%s2643_s7 + $0x17c] sm:$0xf] %vm1386_vm3, %v1353_v13  ;;  %v1738_v17 = vpack.c.bf16 %v1610_v14, %v1610_v14  ;;  %v1770_v18 = vpack.c.bf16 %v1642_v16, %v1642_v16 }
 0x19b   : > { %1514 = vst.msk [vmem:[%s2643_s7 + $0x1fc] sm:$0xf] %vm1386_vm3, %v1385_v15 }
 0x19c   : > { %1866 = vst.msk [vmem:[%s2651_s10 + $0x17c] sm:$0xf] %vm1386_vm3, %v1738_v17 }
 0x19d   : > { %1898 = vst.msk [vmem:[%s2651_s10 + $0x1fc] sm:$0xf] %vm1386_vm3, %v1770_v18 }
 0x19e PF: > { %s15_s17 = sadd.s32 1, %s2501_s17   ;;  %s3368_s15 = smov %s2497_s16 }
 0x19f   : > { %p12_p5 = scmp.ge.s32.totalorder %s15_s17, 4   ;;  %s3369_s16 = smov %s3371_s18 }
 0x1a1   :  { %14 = sbr.rel (!%p12_p5) target bundleno = 2 (0x2), region = 74 }

</bundles_post_ra>
